<compile_context>
chip_gen: v6e
topology: v6e:2x2x1
jax: 0.10.0
libtpu: 0.0.40
codegen_flags: <defaults>
</compile_context>

<pallas_src>
import jax
import jax.numpy as jnp
from jax.experimental import pallas as pl
from jax.experimental.pallas import tpu as pltpu

LANE = 128
_VMEM_LIMIT = 32 * 1024 * 1024  # fits the 64 MiB physical VMEM of v7x with headroom


def _round_up(v, m=LANE):
    return ((v + m - 1) // m) * m


def _pick_batch_tile(n):
    """Batch tile satisfying the (8,128) block rule (multiple of 8 or full dim)."""
    if n <= 8:
        return n
    for t in (32, 16, 8):
        if n % t == 0:
            return t
    return n  # fall back to a single block


# ---------------------------------------------------------------------------
# Stage 1: per-sample backbone embedding (1x1 conv + ReLU + global avg pool)
#          followed by the projector's fc1.  Gridded ("parallel") over batch.
# ---------------------------------------------------------------------------
def _stage1_kernel(x_ref, wc_ref, bc_ref, w1_ref, b1_ref, h_ref):
    # x_ref : (TN, C, S)      input tile (NCHW with H*W merged; no transpose)
    # wc_ref: (E_pad, C)      bf16  1x1-conv weight
    # bc_ref: (E_pad, 1)      f32   conv bias
    # w1_ref: (E_pad, Hd_pad) bf16  fc1 weight, stored [in, out]
    # b1_ref: (1, Hd_pad)     f32   fc1 bias
    # h_ref : (TN, Hd_pad)    f32   fc1 output (pre-BatchNorm)
    tn, c, s = x_ref.shape
    e_pad = wc_ref.shape[0]

    if c <= 16:
        # Tiny channel count: do the contraction as C broadcast-FMAs on the
        # VPU (a K=C MXU pass would be ~3% useful work).  f32 math: v5e-safe.
        x = x_ref[...].astype(jnp.float32)            # (TN, C, S)
        wc = wc_ref[...].astype(jnp.float32)          # (E_pad, C)
        feat = jnp.zeros((tn, e_pad, s), jnp.float32)
        for ci in range(c):                           # static, small C
            feat = feat + x[:, ci:ci + 1, :] * wc[:, ci:ci + 1][None, :, :]
    else:
        # Large C: contract on the MXU, keeping H*W on the lane axis
        # (per-sample (E,C)@(C,HW); bf16 operands, f32 accumulation).
        feat = jnp.einsum(
            "ec,ncs->nes",
            wc_ref[...],
            x_ref[...].astype(jnp.bfloat16),
            preferred_element_type=jnp.float32,
        )

    # conv bias + ReLU, then global average pool over S (sum * 1/S).
    feat = jnp.maximum(feat + bc_ref[...][None, :, :], 0.0)    # (TN, E_pad, S)
    emb = jnp.sum(feat, axis=-1) * (1.0 / float(s))            # (TN, E_pad)

    # projector fc1: bf16 operands on the MXU, f32 accumulation.
    h = jnp.dot(emb.astype(jnp.bfloat16), w1_ref[...],
                preferred_element_type=jnp.float32) + b1_ref[...]
    h_ref[...] = h


# ---------------------------------------------------------------------------
# Stage 2: BatchNorm1d over the FULL batch (training-mode stats, biased var,
#          eps=1e-5) + ReLU + fc2.  Single small un-gridded call.
# ---------------------------------------------------------------------------
def _stage2_kernel(h_ref, g_ref, beta_ref, w2_ref, b2_ref, out_ref):
    h = h_ref[...]                                    # (N, Hd_pad) f32
    n = h.shape[0]
    inv_n = 1.0 / float(n)
    mu = jnp.sum(h, axis=0, keepdims=True) * inv_n
    d = h - mu
    var = jnp.sum(d * d, axis=0, keepdims=True) * inv_n        # biased variance
    hn = d * jax.lax.rsqrt(var + 1e-5)
    hn = hn * g_ref[...] + beta_ref[...]
    hn = jnp.maximum(hn, 0.0)
    out = jnp.dot(hn.astype(jnp.bfloat16), w2_ref[...],
                  preferred_element_type=jnp.float32) + b2_ref[...]
    out_ref[...] = out


# ---------------------------------------------------------------------------
# Wrapper
# ---------------------------------------------------------------------------
def byol_encoder(x_nchw, params):
    """x_nchw: [N, C, H, W]. Returns [N, projection_size] float32."""
    n, c, hh, ww = x_nchw.shape
    s = hh * ww
    # Trailing-dim merge only — no NCHW->NHWC transpose (no extra HBM pass).
    x_tok = x_nchw.reshape(n, c, s)

    e = params["wc"].shape[0]
    hd = params["w1"].shape[1]
    p = params["w2"].shape[1]
    e_pad, hd_pad, p_pad = _round_up(e), _round_up(hd), _round_up(p)

    # Zero-pad lane dims to multiples of 128.  Padded channels stay exactly 0
    # through conv/fc1/BN/fc2, so the math is unchanged.
    f32, bf16 = jnp.float32, jnp.bfloat16
    wc_p = jnp.zeros((e_pad, c), bf16).at[:e, :].set(params["wc"].astype(bf16))
    bc_p = jnp.zeros((e_pad, 1), f32).at[:e, :].set(params["bc"].reshape(e, 1))
    w1_p = jnp.zeros((e_pad, hd_pad), bf16).at[:e, :hd].set(params["w1"].astype(bf16))
    b1_p = jnp.zeros((1, hd_pad), f32).at[:, :hd].set(params["b1"].reshape(1, hd))
    g_p = jnp.zeros((1, hd_pad), f32).at[:, :hd].set(params["gamma"].reshape(1, hd))
    beta_p = jnp.zeros((1, hd_pad), f32).at[:, :hd].set(params["beta"].reshape(1, hd))
    w2_p = jnp.zeros((hd_pad, p_pad), bf16).at[:hd, :p].set(params["w2"].astype(bf16))
    b2_p = jnp.zeros((1, p_pad), f32).at[:, :p].set(params["b2"].reshape(1, p))

    tn = _pick_batch_tile(n)

    # Stage 1: batch-tiled, double-buffered, megacore-parallel.
    h_fc1 = pl.pallas_call(
        _stage1_kernel,
        out_shape=jax.ShapeDtypeStruct((n, hd_pad), jnp.float32),
        grid_spec=pltpu.PrefetchScalarGridSpec(
            num_scalar_prefetch=0,
            grid=(n // tn,),
            in_specs=[
                pl.BlockSpec((tn, c, s), lambda i: (i, 0, 0)),       # pipelined x tiles
                pl.BlockSpec((e_pad, c), lambda i: (0, 0)),          # resident weights
                pl.BlockSpec((e_pad, 1), lambda i: (0, 0)),
                pl.BlockSpec((e_pad, hd_pad), lambda i: (0, 0)),
                pl.BlockSpec((1, hd_pad), lambda i: (0, 0)),
            ],
            out_specs=pl.BlockSpec((tn, hd_pad), lambda i: (i, 0)),
        ),
        compiler_params=pltpu.CompilerParams(
            dimension_semantics=("parallel",),   # shards the batch across 2 TCs on v7x
            vmem_limit_bytes=_VMEM_LIMIT,
        ),
    )(x_tok, wc_p, bc_p, w1_p, b1_p)

    # Stage 2: BN statistics over the whole batch (correct semantics) + fc2.
    vmem = pl.BlockSpec(memory_space=pltpu.MemorySpace.VMEM)
    out_pad = pl.pallas_call(
        _stage2_kernel,
        out_shape=jax.ShapeDtypeStruct((n, p_pad), jnp.float32),
        in_specs=[vmem] * 5,
        out_specs=vmem,
        compiler_params=pltpu.CompilerParams(vmem_limit_bytes=_VMEM_LIMIT),
    )(h_fc1, g_p, beta_p, w2_p, b2_p)

    return out_pad[:, :p]


def init_params(key, in_channels, embedding_size, proj_hidden, proj_size):
    ks = jax.random.split(key, 6)

    def u(k, shape, fan_in):
        bound = 1.0 / jnp.sqrt(fan_in)
        return jax.random.uniform(k, shape, jnp.float32, -bound, bound)

    return {
        # 1x1 conv weight (E, C) == PyTorch (E, C, 1, 1) squeezed.
        "wc": u(ks[0], (embedding_size, in_channels), in_channels),
        "bc": u(ks[1], (embedding_size,), in_channels),
        # Linear weights stored [in, out] == transposed PyTorch [out, in].
        "w1": u(ks[2], (embedding_size, proj_hidden), embedding_size),
        "b1": u(ks[3], (proj_hidden,), embedding_size),
        "gamma": jnp.ones((proj_hidden,), jnp.float32),   # BatchNorm1d defaults
        "beta": jnp.zeros((proj_hidden,), jnp.float32),
        "w2": u(ks[4], (proj_hidden, proj_size), proj_hidden),
        "b2": u(ks[5], (proj_size,), proj_hidden),
    }


if __name__ == "__main__":
    key = jax.random.PRNGKey(0)
    k_x, k_p = jax.random.split(key)

    # Small shapes consistent with the module.
    N, C, H, W = 2, 4, 16, 16
    embedding_size = 32
    projection_hidden_size = 64
    projection_size = 32

    x = jax.random.normal(k_x, (N, C, H, W), jnp.float32)
    params = init_params(k_p, C, embedding_size, projection_hidden_size, projection_size)

    out = jax.jit(byol_encoder)(x, params)
    jax.block_until_ready(out)
    assert out.shape == (N, projection_size)
    assert out.dtype == jnp.float32
    print("KERNEL_OK")
</pallas_src>

<mosaic_0001>
module attributes {stable_mosaic.version = 11 : i64} {
  func.func @_stage1_kernel(%arg0: i32, %arg1: memref<2x4x256xf32, #tpu.memory_space<vmem>>, %arg2: memref<128x4xbf16, #tpu.memory_space<vmem>>, %arg3: memref<128x1xf32, #tpu.memory_space<vmem>>, %arg4: memref<128x128xbf16, #tpu.memory_space<vmem>>, %arg5: memref<1x128xf32, #tpu.memory_space<vmem>>, %arg6: memref<2x128xf32, #tpu.memory_space<vmem>>) attributes {dimension_semantics = [#tpu.dimension_semantics<parallel>], iteration_bounds = array<i64: 1>, scalar_prefetch = 0 : i64, scratch_operands = 0 : i64, tpu.core_type = #tpu.core_type<tc>, window_params = [{transform_indices = @transform_0, window_bounds = array<i64: 2, 4, 256>}, {pipeline_mode = #tpu.pipeline_mode<synchronous>, transform_indices = @transform_1, window_bounds = array<i64: 128, 4>}, {pipeline_mode = #tpu.pipeline_mode<synchronous>, transform_indices = @transform_2, window_bounds = array<i64: 128, 1>}, {pipeline_mode = #tpu.pipeline_mode<synchronous>, transform_indices = @transform_3, window_bounds = array<i64: 128, 128>}, {pipeline_mode = #tpu.pipeline_mode<synchronous>, transform_indices = @transform_4, window_bounds = array<i64: 1, 128>}, {transform_indices = @transform_5, window_bounds = array<i64: 2, 128>}]} {
    %c0 = arith.constant 0 : index
    %c0_0 = arith.constant 0 : index
    %c0_1 = arith.constant 0 : index
    %0 = vector.load %arg1[%c0, %c0_0, %c0_1] : memref<2x4x256xf32, #tpu.memory_space<vmem>>, vector<2x4x256xf32>
    %c0_2 = arith.constant 0 : index
    %c0_3 = arith.constant 0 : index
    %1 = vector.load %arg2[%c0_2, %c0_3] : memref<128x4xbf16, #tpu.memory_space<vmem>>, vector<128x4xbf16>
    %2 = arith.extf %1 : vector<128x4xbf16> to vector<128x4xf32>
    %cst = arith.constant 0.000000e+00 : f32
    %3 = vector.broadcast %cst : f32 to vector<2x128x256xf32>
    %4 = vector.extract_strided_slice %0 {offsets = [0, 0, 0], sizes = [2, 1, 256], strides = [1, 1, 1]} : vector<2x4x256xf32> to vector<2x1x256xf32>
    %5 = vector.extract_strided_slice %2 {offsets = [0, 0], sizes = [128, 1], strides = [1, 1]} : vector<128x4xf32> to vector<128x1xf32>
    %6 = vector.shape_cast %5 : vector<128x1xf32> to vector<1x128x1xf32>
    %7 = vector.broadcast %4 : vector<2x1x256xf32> to vector<2x128x256xf32>
    %8 = vector.broadcast %6 : vector<1x128x1xf32> to vector<2x128x256xf32>
    %9 = arith.mulf %7, %8 : vector<2x128x256xf32>
    %10 = arith.addf %3, %9 : vector<2x128x256xf32>
    %11 = vector.extract_strided_slice %0 {offsets = [0, 1, 0], sizes = [2, 1, 256], strides = [1, 1, 1]} : vector<2x4x256xf32> to vector<2x1x256xf32>
    %12 = vector.extract_strided_slice %2 {offsets = [0, 1], sizes = [128, 1], strides = [1, 1]} : vector<128x4xf32> to vector<128x1xf32>
    %13 = vector.shape_cast %12 : vector<128x1xf32> to vector<1x128x1xf32>
    %14 = vector.broadcast %11 : vector<2x1x256xf32> to vector<2x128x256xf32>
    %15 = vector.broadcast %13 : vector<1x128x1xf32> to vector<2x128x256xf32>
    %16 = arith.mulf %14, %15 : vector<2x128x256xf32>
    %17 = arith.addf %10, %16 : vector<2x128x256xf32>
    %18 = vector.extract_strided_slice %0 {offsets = [0, 2, 0], sizes = [2, 1, 256], strides = [1, 1, 1]} : vector<2x4x256xf32> to vector<2x1x256xf32>
    %19 = vector.extract_strided_slice %2 {offsets = [0, 2], sizes = [128, 1], strides = [1, 1]} : vector<128x4xf32> to vector<128x1xf32>
    %20 = vector.shape_cast %19 : vector<128x1xf32> to vector<1x128x1xf32>
    %21 = vector.broadcast %18 : vector<2x1x256xf32> to vector<2x128x256xf32>
    %22 = vector.broadcast %20 : vector<1x128x1xf32> to vector<2x128x256xf32>
    %23 = arith.mulf %21, %22 : vector<2x128x256xf32>
    %24 = arith.addf %17, %23 : vector<2x128x256xf32>
    %25 = vector.extract_strided_slice %0 {offsets = [0, 3, 0], sizes = [2, 1, 256], strides = [1, 1, 1]} : vector<2x4x256xf32> to vector<2x1x256xf32>
    %26 = vector.extract_strided_slice %2 {offsets = [0, 3], sizes = [128, 1], strides = [1, 1]} : vector<128x4xf32> to vector<128x1xf32>
    %27 = vector.shape_cast %26 : vector<128x1xf32> to vector<1x128x1xf32>
    %28 = vector.broadcast %25 : vector<2x1x256xf32> to vector<2x128x256xf32>
    %29 = vector.broadcast %27 : vector<1x128x1xf32> to vector<2x128x256xf32>
    %30 = arith.mulf %28, %29 : vector<2x128x256xf32>
    %31 = arith.addf %24, %30 : vector<2x128x256xf32>
    %c0_4 = arith.constant 0 : index
    %c0_5 = arith.constant 0 : index
    %32 = vector.load %arg3[%c0_4, %c0_5] : memref<128x1xf32, #tpu.memory_space<vmem>>, vector<128x1xf32>
    %33 = vector.shape_cast %32 : vector<128x1xf32> to vector<1x128x1xf32>
    %34 = vector.broadcast %33 : vector<1x128x1xf32> to vector<2x128x256xf32>
    %35 = arith.addf %31, %34 : vector<2x128x256xf32>
    %cst_6 = arith.constant 0.000000e+00 : f32
    %36 = vector.broadcast %cst_6 : f32 to vector<2x128x256xf32>
    %37 = arith.maximumf %35, %36 : vector<2x128x256xf32>
    %cst_7 = arith.constant dense<0.000000e+00> : vector<2x128xf32>
    %38 = vector.multi_reduction <add>, %37, %cst_7 [2] : vector<2x128x256xf32> to vector<2x128xf32>
    %cst_8 = arith.constant 3.906250e-03 : f32
    %39 = vector.broadcast %cst_8 : f32 to vector<2x128xf32>
    %40 = arith.mulf %38, %39 : vector<2x128xf32>
    %41 = arith.truncf %40 : vector<2x128xf32> to vector<2x128xbf16>
    %c0_9 = arith.constant 0 : index
    %c0_10 = arith.constant 0 : index
    %42 = vector.load %arg4[%c0_9, %c0_10] : memref<128x128xbf16, #tpu.memory_space<vmem>>, vector<128x128xbf16>
    %cst_11 = arith.constant dense<0.000000e+00> : vector<2x128xf32>
    %43 = tpu.matmul %41, %42, %cst_11 {dimension_numbers = #tpu.dot_dimension_numbers<[1], [0], [0], [1], [0, 0, 1, 1], [], []>} : vector<2x128xbf16>, vector<128x128xbf16>, vector<2x128xf32> -> vector<2x128xf32>
    %c0_12 = arith.constant 0 : index
    %c0_13 = arith.constant 0 : index
    %44 = vector.load %arg5[%c0_12, %c0_13] : memref<1x128xf32, #tpu.memory_space<vmem>>, vector<1x128xf32>
    %45 = vector.broadcast %44 : vector<1x128xf32> to vector<2x128xf32>
    %46 = arith.addf %43, %45 : vector<2x128xf32>
    %c0_14 = arith.constant 0 : index
    %c0_15 = arith.constant 0 : index
    %47 = vector.load %arg6[%c0_14, %c0_15] : memref<2x128xf32, #tpu.memory_space<vmem>>, vector<2x128xf32>
    tpu.vector_store %arg6[%c0_14, %c0_15], %46 {strides = array<i32>} : memref<2x128xf32, #tpu.memory_space<vmem>>, vector<2x128xf32>,
    return
  }
  func.func @transform_0(%arg0: i32) -> (i32, i32, i32) {
    %c0_i32 = arith.constant 0 : i32
    %c0_i32_0 = arith.constant 0 : i32
    %c0_i32_1 = arith.constant 0 : i32
    return %arg0, %c0_i32, %c0_i32_0 : i32, i32, i32
  }
  func.func @transform_1(%arg0: i32) -> (i32, i32) {
    %c0_i32 = arith.constant 0 : i32
    %c0_i32_0 = arith.constant 0 : i32
    %c0_i32_1 = arith.constant 0 : i32
    return %c0_i32, %c0_i32_0 : i32, i32
  }
  func.func @transform_2(%arg0: i32) -> (i32, i32) {
    %c0_i32 = arith.constant 0 : i32
    %c0_i32_0 = arith.constant 0 : i32
    %c0_i32_1 = arith.constant 0 : i32
    return %c0_i32, %c0_i32_0 : i32, i32
  }
  func.func @transform_3(%arg0: i32) -> (i32, i32) {
    %c0_i32 = arith.constant 0 : i32
    %c0_i32_0 = arith.constant 0 : i32
    %c0_i32_1 = arith.constant 0 : i32
    return %c0_i32, %c0_i32_0 : i32, i32
  }
  func.func @transform_4(%arg0: i32) -> (i32, i32) {
    %c0_i32 = arith.constant 0 : i32
    %c0_i32_0 = arith.constant 0 : i32
    %c0_i32_1 = arith.constant 0 : i32
    return %c0_i32, %c0_i32_0 : i32, i32
  }
  func.func @transform_5(%arg0: i32) -> (i32, i32) {
    %c0_i32 = arith.constant 0 : i32
    %c0_i32_0 = arith.constant 0 : i32
    return %arg0, %c0_i32 : i32, i32
  }
}

module attributes {stable_mosaic.version = 11 : i64} {
  func.func @_stage2_kernel(%arg0: memref<2x128xf32, #tpu.memory_space<vmem>>, %arg1: memref<1x128xf32, #tpu.memory_space<vmem>>, %arg2: memref<1x128xf32, #tpu.memory_space<vmem>>, %arg3: memref<128x128xbf16, #tpu.memory_space<vmem>>, %arg4: memref<1x128xf32, #tpu.memory_space<vmem>>, %arg5: memref<2x128xf32, #tpu.memory_space<vmem>>) attributes {dimension_semantics = [], scalar_prefetch = 0 : i64, scratch_operands = 0 : i64, tpu.core_type = #tpu.core_type<tc>} {
    %c0 = arith.constant 0 : index
    %c0_0 = arith.constant 0 : index
    %0 = vector.load %arg0[%c0, %c0_0] : memref<2x128xf32, #tpu.memory_space<vmem>>, vector<2x128xf32>
    %cst = arith.constant dense<0.000000e+00> : vector<128xf32>
    %1 = vector.multi_reduction <add>, %0, %cst [0] : vector<2x128xf32> to vector<128xf32>
    %2 = vector.shape_cast %1 : vector<128xf32> to vector<1x128xf32>
    %cst_1 = arith.constant 5.000000e-01 : f32
    %3 = vector.broadcast %cst_1 : f32 to vector<1x128xf32>
    %4 = arith.mulf %2, %3 : vector<1x128xf32>
    %5 = vector.broadcast %4 : vector<1x128xf32> to vector<2x128xf32>
    %6 = arith.subf %0, %5 : vector<2x128xf32>
    %7 = arith.mulf %6, %6 : vector<2x128xf32>
    %cst_2 = arith.constant dense<0.000000e+00> : vector<128xf32>
    %8 = vector.multi_reduction <add>, %7, %cst_2 [0] : vector<2x128xf32> to vector<128xf32>
    %9 = vector.shape_cast %8 : vector<128xf32> to vector<1x128xf32>
    %cst_3 = arith.constant 5.000000e-01 : f32
    %10 = vector.broadcast %cst_3 : f32 to vector<1x128xf32>
    %11 = arith.mulf %9, %10 : vector<1x128xf32>
    %cst_4 = arith.constant 9.99999974E-6 : f32
    %12 = vector.broadcast %cst_4 : f32 to vector<1x128xf32>
    %13 = arith.addf %11, %12 : vector<1x128xf32>
    %14 = math.rsqrt %13 : vector<1x128xf32>
    %15 = vector.broadcast %14 : vector<1x128xf32> to vector<2x128xf32>
    %16 = arith.mulf %6, %15 : vector<2x128xf32>
    %c0_5 = arith.constant 0 : index
    %c0_6 = arith.constant 0 : index
    %17 = vector.load %arg1[%c0_5, %c0_6] : memref<1x128xf32, #tpu.memory_space<vmem>>, vector<1x128xf32>
    %18 = vector.broadcast %17 : vector<1x128xf32> to vector<2x128xf32>
    %19 = arith.mulf %16, %18 : vector<2x128xf32>
    %c0_7 = arith.constant 0 : index
    %c0_8 = arith.constant 0 : index
    %20 = vector.load %arg2[%c0_7, %c0_8] : memref<1x128xf32, #tpu.memory_space<vmem>>, vector<1x128xf32>
    %21 = vector.broadcast %20 : vector<1x128xf32> to vector<2x128xf32>
    %22 = arith.addf %19, %21 : vector<2x128xf32>
    %cst_9 = arith.constant 0.000000e+00 : f32
    %23 = vector.broadcast %cst_9 : f32 to vector<2x128xf32>
    %24 = arith.maximumf %22, %23 : vector<2x128xf32>
    %25 = arith.truncf %24 : vector<2x128xf32> to vector<2x128xbf16>
    %c0_10 = arith.constant 0 : index
    %c0_11 = arith.constant 0 : index
    %26 = vector.load %arg3[%c0_10, %c0_11] : memref<128x128xbf16, #tpu.memory_space<vmem>>, vector<128x128xbf16>
    %cst_12 = arith.constant dense<0.000000e+00> : vector<2x128xf32>
    %27 = tpu.matmul %25, %26, %cst_12 {dimension_numbers = #tpu.dot_dimension_numbers<[1], [0], [0], [1], [0, 0, 1, 1], [], []>} : vector<2x128xbf16>, vector<128x128xbf16>, vector<2x128xf32> -> vector<2x128xf32>
    %c0_13 = arith.constant 0 : index
    %c0_14 = arith.constant 0 : index
    %28 = vector.load %arg4[%c0_13, %c0_14] : memref<1x128xf32, #tpu.memory_space<vmem>>, vector<1x128xf32>
    %29 = vector.broadcast %28 : vector<1x128xf32> to vector<2x128xf32>
    %30 = arith.addf %27, %29 : vector<2x128xf32>
    %c0_15 = arith.constant 0 : index
    %c0_16 = arith.constant 0 : index
    %31 = vector.load %arg5[%c0_15, %c0_16] : memref<2x128xf32, #tpu.memory_space<vmem>>, vector<2x128xf32>
    tpu.vector_store %arg5[%c0_15, %c0_16], %30 {strides = array<i32>} : memref<2x128xf32, #tpu.memory_space<vmem>>, vector<2x128xf32>,
    return
  }
}

</mosaic_0001>

<bundles_post_ra>
// kernel: byol_encoder.3
= control target key start
LH: loop header
LB: loop body
LE: loop exit
PB: predicated region body
PF: predicated region fallthrough
CT: control target
= control target key end

     0   :  { %v264_v1 = vmov 0.0   ;;  %vm265_vm0 = vmmov 0   ;;  %vm23_vm1 = vcmask 1041408   ;;  %s338_s0 = inlined_call_operand.vmem [shape: f32[2,128], index: 0, kind: input, shape index: {}]   ;;  %s339_s1 = inlined_call_operand.vmem [shape: f32[1,128], index: 1, kind: input, shape index: {}]   ;;  %s340_s2 = inlined_call_operand.vmem [shape: f32[1,128], index: 2, kind: input, shape index: {}]   ;;  %s341_s3 = inlined_call_operand.vmem [shape: bf16[128,128], index: 3, kind: input, shape index: {}]   ;;  %s342_s4 = inlined_call_operand.vmem [shape: f32[1,128], index: 4, kind: input, shape index: {}]   ;;  %s343_s5 = inlined_call_operand.hbm [shape: f32[2,128], index: 5, kind: output, shape index: {}]  }
   0x1   :  { %v232_v0 = vld [vmem:[%s341_s3 + $0x38] sm:$0xff]   ;;  %209 = vmatprep.subr.bf16.mxu0 %v264_v1  ;;  %v233_v2 = vld [vmem:[%s341_s3 + $0x30] sm:$0xff]   ;;  %225 = vmatprep.mubr.msk.bf16.mxu0 %vm265_vm0, %v264_v1  ;;  %v234_v3 = vld [vmem:[%s341_s3 + $0x28] sm:$0xff]  }
   0x2   :  { %210 = vmatpush3.bf16.msra.mxu0 %v232_v0  ;;  %v22_v4 = vld [vmem:[%s338_s0] sm:$0x3] }
   0x3   :  { %211 = vmatprep.subr.bf16.mxu0 %v264_v1  ;;  %v24_v5 = vsel %vm23_vm1, %v22_v4, 0.0 }
   0x6   :  { %212 = vmatpush3.bf16.msra.mxu0 %v233_v2 }
   0x7   :  { %213 = vmatprep.subr.bf16.mxu0 %v264_v1 }
   0x8   :  { %10 = vsyncpa [#allocation3], 0  ;;  %v235_v6 = vld [vmem:[%s341_s3 + $0x20] sm:$0xff]   ;;  %v25_v7 = vrot.slane %v24_v5, 4  ;;  %v236_v9 = vld [vmem:[%s341_s3 + $0x18] sm:$0xff]   ;;  %s266_s15 = smov [#allocation2]  }
   0x9   :  { %v237_v12 = vld [vmem:[%s341_s3 + $0x10] sm:$0xff]   ;;  %v238_v15 = vld [vmem:[%s341_s3 + $0x8] sm:$0xff]   ;;  %v239_v18 = vld [vmem:[%s341_s3] sm:$0xff]   ;;  %s181_s16 = sshll.u32 %s266_s15, 4  ;;  %s182_s16 = int_to_ptr.vmem [resolvable:$true] %s181_s16 }
   0xa   :  { %214 = vmatpush3.bf16.msra.mxu0 %v234_v3  ;;  %v26_v8 = vadd.f32 %v25_v7, %v24_v5  ;;  %v189_v30 = vld [vmem:[%s339_s1] ss:$0 sm:$0xff]  ;;  %s242_s1 = scalar_lea.vmem %s182_s16, 32  ;;  %p247_p1 = scmp.lt.s32.totalorder %s182_s16, %s182_s16 }
   0xb   :  { %215 = vmatprep.subr.bf16.mxu0 %v264_v1  ;;  %v190_v32 = vld [vmem:[%s340_s2] ss:$0 sm:$0xff]  ;;  %p243_p0 = scmp.ne.s32.totalorder %s182_s16, %s242_s1  ;;  %p248_p2 = scmp.lt.s32.totalorder %s242_s1, %s242_s1 }
   0xc   :  { %v27_v10 = vrot.slane %v26_v8, 2  ;;  %v191_v37 = vld [vmem:[%s342_s4] ss:$0 sm:$0xff] }
   0xd   :  { %p249_p3 = por %p248_p2, %p247_p1 }
   0xe   :  { %216 = vmatpush3.bf16.msra.mxu0 %v235_v6  ;;  %v28_v11 = vadd.f32 %v27_v10, %v26_v8 }
   0xf   :  { %217 = vmatprep.subr.bf16.mxu0 %v264_v1  ;;  %p250_p4 = pnand %p249_p3, %p243_p0 }
  0x10   :  { %v29_v13 = vrot.slane %v28_v11, 1 }
  0x12   :  { %218 = vmatpush3.bf16.msra.mxu0 %v236_v9  ;;  %v30_v14 = vadd.f32 %v29_v13, %v28_v11 }
  0x13   :  { %219 = vmatprep.subr.bf16.mxu0 %v264_v1 }
  0x14   :  { %v31_v16 = vmul.f32 0.5, %v30_v14 }
  0x16   :  { %220 = vmatpush3.bf16.msra.mxu0 %v237_v12  ;;  %v32_v17 = vsub.f32 %v22_v4, %v31_v16 }
  0x17   :  { %221 = vmatprep.subr.bf16.mxu0 %v264_v1 }
  0x18   :  { %v33_v19 = vmul.f32 %v32_v17, %v32_v17 }
  0x1a   :  { %222 = vmatpush3.bf16.msra.mxu0 %v238_v15  ;;  %v34_v20 = vsel %vm23_vm1, %v33_v19, 0.0 }
  0x1b   :  { %223 = vmatprep.subr.bf16.mxu0 %v264_v1  ;;  %v35_v21 = vrot.slane %v34_v20, 4 }
  0x1d   :  { %v36_v22 = vadd.f32 %v35_v21, %v34_v20 }
  0x1e   :  { %224 = vmatpush3.bf16.msra.mxu0 %v239_v18 }
  0x1f   :  { %v37_v23 = vrot.slane %v36_v22, 2 }
  0x21   :  { %v38_v24 = vadd.f32 %v37_v23, %v36_v22 }
  0x23   :  { %v39_v25 = vrot.slane %v38_v24, 1 }
  0x25   :  { %v40_v26 = vadd.f32 %v39_v25, %v38_v24 }
  0x27   :  { %v41_v27 = vmul.f32 0.5, %v40_v26 }
  0x29   :  { %v42_v28 = vadd.f32 1e-05, %v41_v27 }
  0x2b   :  { %240 = vrsqrt.f32 %v42_v28 }
  0x38   :  { %v241_v29 = vpop.eup %240 }
  0x39   :  { %v44_v31 = vmul.f32 %v241_v29, %v32_v17 }
  0x3b   :  { %v52_v33 = vmul.f32 %v189_v30, %v44_v31 }
  0x3d   :  { %v60_v34 = vadd.f32 %v190_v32, %v52_v33 }
  0x3f   :  { %v61_v35 = vmax.f32 %v60_v34, 0.0 }
  0x41   :  { %v62_v36 = vpack.c.bf16 %v61_v35, %v61_v35 }
  0x43   :  { %226 = vmatmul.mubr.bf16.vlgmr.msra.gmra.mxu0 %v62_v36 }
 0x103   :  { %v168_v38 = vpop.f32.mrf.mxu0 }
 0x104   :  { %v169_v39 = vadd.f32 %v191_v37, %v168_v38 }
 0x105   :  { %v227_v40 = vpop.f32.mrf.mxu0 }
 0x106   :  { %174 = vst [vmem:[#allocation2] sm:$0x3] %v169_v39 }
 0x107   :  { %v171_v41 = vpop.f32.mrf.mxu0 }
 0x108   :  { %253 = shalt.err (!%p250_p4)
}
 0x109   :  { %184 = dma.vmem_to_hbm [thread:$0]  %s182_s16, 32, %s343_s5, [#allocation3]   ;;  %v228_v42 = vpop.f32.mrf.mxu0 }
 0x10a   :  { %262 = dma.done.wait [#allocation3], 32  }
 0x10b   :  { %263 = vsyncadd [#allocation3], 4294967264 }
 0x10c   :  { %188 = vsyncpa [#allocation3], 1 }

// kernel: byol_encoder.2
= control target key start
LH: loop header
LB: loop body
LE: loop exit
PB: predicated region body
PF: predicated region fallthrough
CT: control target
= control target key end

     0   :  { %v1985_v0 = vmov 1   ;;  %v1986_v1 = vmov 0   ;;  %v1987_v34 = vmov 2   ;;  %v1988_v35 = vmov 3   ;;  %s3231_s1 = inlined_call_operand.vmem [shape: bf16[128,4], index: 1, kind: input, shape index: {}]   ;;  %s3232_s2 = inlined_call_operand.vmem [shape: f32[128,1], index: 2, kind: input, shape index: {}]   ;;  %s3233_s0 = inlined_call_operand.vmem [shape: f32[2,4,256], index: 0, kind: input, shape index: {}]   ;;  %s3234_s3 = inlined_call_operand.vmem [shape: bf16[128,128], index: 3, kind: input, shape index: {}]   ;;  %s3235_s4 = inlined_call_operand.vmem [shape: f32[1,128], index: 4, kind: input, shape index: {}]   ;;  %s3236_s5 = inlined_call_operand.vmem [shape: f32[2,128], index: 5, kind: output, shape index: {}]  }
   0x1   :  { %1805 = vset.pattern.permute.xlu0 %v1985_v0  ;;  %1794 = vset.pattern.permute.xlu1 %v1986_v1  ;;  %v1753_v2 = vld [vmem:[%s3231_s1 + $0x10] sm:$0xff]   ;;  %v1721_v3 = vld [vmem:[%s3231_s1] sm:$0xff]   ;;  %v1754_v4 = vld [vmem:[%s3231_s1 + $0x18] sm:$0xff]   ;;  %v3237_v46 = vlaneseq  ;;  %vm1990_vm0 = vmmov 0   ;;  %vm1435_vm1 = vcmask 130112   ;;  %vm1442_vm2 = vcmask 195712  }
   0x2   :  { %v1730_v5 = vunpack.c.l.bf16 %v1753_v2  ;;  %v1731_v6 = vunpack.c.h.bf16 %v1753_v2  ;;  %v1722_v7 = vunpack.c.l.bf16 %v1721_v3  ;;  %v1723_v8 = vunpack.c.h.bf16 %v1721_v3  ;;  %v1755_v11 = vld [vmem:[%s3231_s1 + $0x20] sm:$0xff]   ;;  %v1752_v14 = vld [vmem:[%s3231_s1 + $0x8] sm:$0xff]   ;;  %v1757_v21 = vld [vmem:[%s3231_s1 + $0x30] sm:$0xff]  }
   0x3   :  { %v1734_v9 = vunpack.c.l.bf16 %v1754_v4  ;;  %v1735_v10 = vunpack.c.h.bf16 %v1754_v4  ;;  %v1738_v16 = vunpack.c.l.bf16 %v1755_v11  ;;  %v1739_v17 = vunpack.c.h.bf16 %v1755_v11  ;;  %v1756_v20 = vld [vmem:[%s3231_s1 + $0x28] sm:$0xff]   ;;  %v1758_v22 = vld [vmem:[%s3231_s1 + $0x38] sm:$0xff]   ;;  %v985_v37 = vld [vmem:[%s3232_s2] sm:$0xff] }
   0x4   :  { %v1795_v12 = vpack.i.bf16 %v1731_v6, %v1730_v5  ;;  %v1806_v13 = vpack.i.bf16 %v1723_v8, %v1722_v7  ;;  %v1726_v18 = vunpack.c.l.bf16 %v1752_v14  ;;  %v1727_v19 = vunpack.c.h.bf16 %v1752_v14  ;;  %v986_v36 = vld [vmem:[%s3232_s2 + $0x8] sm:$0xff]  ;;  %v987_v38 = vld [vmem:[%s3232_s2 + $0x10] sm:$0xff]  ;;  %v989_v39 = vld [vmem:[%s3232_s2 + $0x20] sm:$0xff] }
   0x5   :  { %v2037_v15 = vpack.i.bf16 %v1735_v10, %v1734_v9  ;;  %v2049_v23 = vpack.i.bf16 %v1739_v17, %v1738_v16  ;;  %v1742_v24 = vunpack.c.l.bf16 %v1756_v20  ;;  %v1743_v25 = vunpack.c.h.bf16 %v1756_v20  ;;  %v991_v40 = vld [vmem:[%s3232_s2 + $0x30] sm:$0xff]  ;;  %v996_v41 = vld [vmem:[%s3232_s2 + $0x58] sm:$0xff]  ;;  %v990_v44 = vld [vmem:[%s3232_s2 + $0x28] sm:$0xff] }
   0x6   :  { %1796 = vperm.xlu1 %1794, %v1795_v12   ;;  %1807 = vperm.xlu0 %1805, %v1806_v13   ;;  %v1746_v26 = vunpack.c.l.bf16 %v1757_v21  ;;  %v1812_v27 = vpack.i.bf16 %v1727_v19, %v1726_v18  ;;  %v1747_v28 = vunpack.c.h.bf16 %v1757_v21  ;;  %v1750_v29 = vunpack.c.l.bf16 %v1758_v22  ;;  %v988_v42 = vld [vmem:[%s3232_s2 + $0x18] sm:$0xff]  ;;  %v999_v43 = vld [vmem:[%s3232_s2 + $0x70] sm:$0xff]  ;;  %v993_v48 = vld [vmem:[%s3232_s2 + $0x40] sm:$0xff] }
   0x7   :  { %v1751_v30 = vunpack.c.h.bf16 %v1758_v22  ;;  %v2051_v31 = vpack.i.bf16 %v1743_v25, %v1742_v24  ;;  %v992_v45 = vld [vmem:[%s3232_s2 + $0x38] sm:$0xff]  ;;  %v2118_v47 = vshrl.u32 %v3237_v46, 7  ;;  %v21_v51 = vld [vmem:[%s3233_s0] sm:$0xff]  ;;  %v22_v52 = vld [vmem:[%s3233_s0 + $0x8] sm:$0xff]  ;;  %vm1449_vm3 = vcmask 261312  }
   0x8   :  { %v2055_v33 = vpack.i.bf16 %v1747_v28, %v1746_v26  ;;  %v994_v55 = vld [vmem:[%s3232_s2 + $0x48] sm:$0xff]  ;;  %v995_v5 = vld [vmem:[%s3232_s2 + $0x50] sm:$0xff]  ;;  %v997_v25 = vld [vmem:[%s3232_s2 + $0x60] sm:$0xff]  ;;  %vm1456_vm4 = vcmask 326912   ;;  %vm1463_vm5 = vcmask 392512   ;;  %vm1470_vm6 = vcmask 458112  }
   0x9   :  { %v2053_v32 = vpack.i.bf16 %v1751_v30, %v1750_v29  ;;  %3255 = vst [vmem:[#allocation2_spill] sm:$0xff] %v2118_v47  ;;  %v59_v49 = vsub.s32 0, %v2118_v47  ;;  %v63_v50 = vsub.s32 4, %v2118_v47  ;;  %v303_v53 = vsub.s32 1, %v2118_v47 }
   0xa   :  { %1801 = vperm.xlu1 %1794, %v2037_v15   ;;  %1824 = vperm.xlu0 %1805, %v1795_v12   ;;  %v307_v54 = vsub.s32 5, %v2118_v47  ;;  %v531_v58 = vsub.s32 2, %v2118_v47  ;;  %v535_v61 = vsub.s32 6, %v2118_v47  ;;  %v759_v62 = vsub.s32 3, %v2118_v47 }
   0xb   :  { %v60_v56 = vrot.slane %v21_v51, %v59_v49  ;;  %v64_v57 = vrot.slane %v21_v51, %v63_v50  ;;  %v68_v59 = vrot.slane %v22_v52, %v59_v49  ;;  %v72_v60 = vrot.slane %v22_v52, %v63_v50 }
   0xc   :  { %v763_v63 = vsub.s32 7, %v2118_v47  ;;  %v312_v2 = vrot.slane %v22_v52, %v303_v53  ;;  %v316_v6 = vrot.slane %v22_v52, %v307_v54  ;;  %v532_v7 = vrot.slane %v21_v51, %v531_v58 }
   0xd   :  { %v2143_v3 = vrot.slane %v60_v56, %v59_v49  ;;  %v2145_v4 = vrot.slane %v64_v57, %v59_v49  ;;  %v2150_v8 = vrot.slane %v68_v59, %v59_v49  ;;  %v2152_v9 = vrot.slane %v72_v60, %v59_v49 }
   0xe   :  { %1811 = vset.pattern.permute.xlu1 %v1985_v0  ;;  %1852 = vperm.xlu0 %1805, %v2049_v23   ;;  %v536_v10 = vrot.slane %v21_v51, %v535_v61  ;;  %v540_v11 = vrot.slane %v22_v52, %v531_v58  ;;  %v764_v14 = vrot.slane %v21_v51, %v763_v63  ;;  %vm1477_vm7 = vcmask 523712  }
   0xf   :  { %1813 = vperm.xlu1 %1811, %v1812_v27   ;;  %v2158_v20 = vrot.slane %v312_v2, %v303_v53  ;;  %v772_v21 = vrot.slane %v22_v52, %v763_v63  ;;  %v2160_v24 = vrot.slane %v316_v6, %v303_v53  ;;  %v2165_v26 = vrot.slane %v532_v7, %v531_v58  ;;  %v1000_v2 = vld [vmem:[%s3232_s2 + $0x78] sm:$0xff] }
  0x10   :  { %v2167_v29 = vrot.slane %v536_v10, %v531_v58  ;;  %v2169_v30 = vrot.slane %v540_v11, %v531_v58  ;;  %vm1484_vm8 = vcmask 589312   ;;  %vm1491_vm9 = vcmask 654912  }
  0x11   :  { %vm1498_vm10 = vcmask 720512   ;;  %vm1505_vm11 = vcmask 786112   ;;  %vm1512_vm12 = vcmask 851712   ;;  %vm1519_vm13 = vcmask 917312  }
  0x12   :  { %1875 = vperm.xlu0 %1805, %v2051_v31   ;;  %vm1526_vm14 = vcmask 982912   ;;  %vm1533_vm15 = vcmask 1048512  }
  0x13   :  { %1817 = vset.pattern.permute.xlu1 %v1987_v34 }
  0x14   :  { %1819 = vperm.xlu1 %1817, %v1806_v13  }
  0x16   :  { %1898 = vperm.xlu0 %1805, %v2055_v33  }
  0x18   :  { %1829 = vperm.xlu1 %1817, %v1812_v27  }
  0x1a   :  { %1921 = vperm.xlu0 %1805, %v2053_v32  }
  0x1c   :  { %1833 = vset.pattern.permute.xlu1 %v1985_v0  ;;  %v304_v0 = vrot.slane %v21_v51, %v303_v53 }
  0x1d   :  { %1835 = vperm.xlu1 %1833, %v2037_v15  }
  0x1e   :  { %1925 = vset.pattern.permute.xlu0 %v1988_v35  ;;  %v2154_v18 = vrot.slane %v304_v0, %v303_v53 }
  0x1f   :  { %1927 = vperm.xlu0 %1925, %v1806_v13  }
  0x21   :  { %1839 = vset.pattern.permute.xlu1 %v1987_v34 }
  0x22   :  { %1841 = vperm.xlu1 %1839, %v1795_v12  }
  0x23   :  { %1932 = vperm.xlu0 %1925, %v1812_v27  }
  0x26   :  { %1845 = vset.pattern.permute.xlu1 %v1986_v1 }
  0x27   :  { %1847 = vperm.xlu1 %1845, %v2049_v23   ;;  %1956 = vperm.xlu0 %1925, %v2055_v33  }
  0x2b   :  { %1856 = vset.pattern.permute.xlu1 %v1987_v34  ;;  %1962 = vperm.xlu0 %1925, %v2053_v32  }
  0x2c   :  { %1858 = vperm.xlu1 %1856, %v2037_v15  }
  0x2f   :  { %1966 = vset.pattern.permute.xlu0 %v1986_v1 }
  0x30   :  { %1862 = vset.pattern.permute.xlu1 %v1988_v35  ;;  %1968 = vperm.xlu0 %1966, %v1806_v13   ;;  %v760_v13 = vrot.slane %v21_v51, %v759_v62 }
  0x31   :  { %1864 = vperm.xlu1 %1862, %v1795_v12   ;;  %v544_v12 = vrot.slane %v22_v52, %v535_v61 }
  0x34   :  { %1973 = vperm.xlu0 %1966, %v1812_v27  }
  0x35   :  { %1868 = vset.pattern.permute.xlu1 %v1986_v1 }
  0x36   :  { %1008 = vperm.xlu1 %1868, %v986_v36  }
  0x38   :  { %1003 = vperm.xlu0 %1966, %v985_v37  }
  0x3a   :  { %1870 = vperm.xlu1 %1868, %v2051_v31  }
  0x3c   :  { %1013 = vperm.xlu0 %1966, %v987_v38  }
  0x3e   :  { %1879 = vset.pattern.permute.xlu1 %v1987_v34 }
  0x3f   :  { %1881 = vperm.xlu1 %1879, %v2049_v23  }
  0x40   :  { %1023 = vperm.xlu0 %1966, %v989_v39  }
  0x43   :  { %1885 = vset.pattern.permute.xlu1 %v1988_v35 }
  0x44   :  { %1887 = vperm.xlu1 %1885, %v2037_v15   ;;  %1033 = vperm.xlu0 %1966, %v991_v40   ;;  %v768_v15 = vrot.slane %v22_v52, %v759_v62  ;;  %v2184_v40 = vrot.slane %v772_v21, %v759_v62 }
  0x46   :  { %3260 = vst [vmem:[#allocation7_spill] sm:$0xff] %v2184_v40 }
  0x48   :  { %1891 = vset.pattern.permute.xlu1 %v1986_v1  ;;  %1058 = vperm.xlu0 %1966, %v996_v41  }
  0x49   :  { %1018 = vperm.xlu1 %1891, %v988_v42  }
  0x4c   :  { %1073 = vperm.xlu0 %1966, %v999_v43  }
  0x4d   :  { %1893 = vperm.xlu1 %1891, %v2055_v33  }
  0x51   :  { %1902 = vset.pattern.permute.xlu1 %v1987_v34 }
  0x52   :  { %1904 = vperm.xlu1 %1902, %v2051_v31  }
  0x56   :  { %1908 = vset.pattern.permute.xlu1 %v1988_v35 }
  0x57   :  { %1910 = vperm.xlu1 %1908, %v2049_v23  }
  0x5b   :  { %1914 = vset.pattern.permute.xlu1 %v1986_v1 }
  0x5c   :  { %1028 = vperm.xlu1 %1914, %v990_v44  }
  0x60   :  { %1916 = vperm.xlu1 %1914, %v2053_v32  }
  0x64   :  { %1936 = vset.pattern.permute.xlu1 %v1987_v34 }
  0x65   :  { %1938 = vperm.xlu1 %1936, %v2055_v33   ;;  %v2175_v33 = vrot.slane %v764_v14, %v759_v62 }
  0x67   :  { %3257 = vst [vmem:[#allocation4_spill] sm:$0xff] %v2175_v33 }
  0x69   :  { %1942 = vset.pattern.permute.xlu1 %v1988_v35 }
  0x6a   :  { %1944 = vperm.xlu1 %1942, %v2051_v31   ;;  %v2171_v31 = vrot.slane %v544_v12, %v531_v58 }
  0x6e   :  { %1948 = vset.pattern.permute.xlu1 %v1986_v1 }
  0x6f   :  { %1038 = vperm.xlu1 %1948, %v992_v45   ;;  %v998_v45 = vld [vmem:[%s3232_s2 + $0x68] sm:$0xff] }
  0x73   :  { %1949 = vset.pattern.permute.xlu1 %v1987_v34  ;;  %v2177_v34 = vrot.slane %v768_v15, %v759_v62 }
  0x74   :  { %1951 = vperm.xlu1 %1949, %v2053_v32   ;;  %v2173_v32 = vrot.slane %v760_v13, %v759_v62 }
  0x75   :  { %3258 = vst [vmem:[#allocation5_spill] sm:$0xff] %v2177_v34 }
  0x76   :  { %3256 = vst [vmem:[#allocation3_spill] sm:$0xff] %v2173_v32 }
  0x78   :  { %1960 = vset.pattern.permute.xlu1 %v1986_v1  ;;  %v308_v1 = vrot.slane %v21_v51, %v307_v54 }
  0x79   :  { %1043 = vperm.xlu1 %1960, %v993_v48  }
  0x7a   :  { %v2156_v19 = vrot.slane %v308_v1, %v303_v53 }
  0x7d   :  { %1048 = vperm.xlu1 %1960, %v994_v55  }
  0x81   :  { %v1797_v16 = vpop.permute.xlu1 %1796  ;;  %1053 = vperm.xlu1 %1960, %v995_v5   ;;  %v1808_v17 = vpop.permute.xlu0 %1807 }
  0x82   :  { %v1799_v22 = vunpack.i.h.bf16 %v1797_v16  ;;  %v1798_v23 = vunpack.i.l.bf16 %v1797_v16  ;;  %v1810_v27 = vunpack.i.h.bf16 %v1808_v17  ;;  %v1809_v28 = vunpack.i.l.bf16 %v1808_v17 }
  0x84   :  { %v181_v35 = vmul.f32 %v1798_v23, %v2143_v3  ;;  %v182_v36 = vmul.f32 %v1798_v23, %v2145_v4  ;;  %v2182_v37 = vmul.f32 %v1799_v22, %v2143_v3  ;;  %v2187_v41 = vmul.f32 %v1799_v22, %v2145_v4 }
  0x85   :  { %v1802_v38 = vpop.permute.xlu1 %1801  ;;  %1063 = vperm.xlu1 %1960, %v997_v25   ;;  %v1825_v39 = vpop.permute.xlu0 %1824  ;;  %v2190_v42 = vmul.f32 %v1798_v23, %v2150_v8  ;;  %v2193_v43 = vmul.f32 %v1798_v23, %v2152_v9  ;;  %v2196_v44 = vmul.f32 %v1799_v22, %v2150_v8  ;;  %v2202_v48 = vmul.f32 %v1799_v22, %v2152_v9 }
  0x86   :  { %3259 = vst [vmem:[#allocation6_spill] sm:$0xff] %v2182_v37  ;;  %3261 = vst [vmem:[#allocation8_spill] sm:$0xff] %v2187_v41  ;;  %v2205_v49 = vmul.f32 %v1809_v28, %v2154_v18  ;;  %v2208_v50 = vmul.f32 %v1809_v28, %v2156_v19  ;;  %v2211_v51 = vmul.f32 %v1810_v27, %v2154_v18  ;;  %v1804_v52 = vunpack.i.h.bf16 %v1802_v38 }
  0x87   :  { %3262 = vst [vmem:[#allocation9_spill] sm:$0xff] %v2190_v42  ;;  %3263 = vst [vmem:[#allocation10_spill] sm:$0xff] %v2193_v43  ;;  %v1803_v53 = vunpack.i.l.bf16 %v1802_v38  ;;  %v1827_v54 = vunpack.i.h.bf16 %v1825_v39  ;;  %v1826_v55 = vunpack.i.l.bf16 %v1825_v39  ;;  %v2214_v56 = vmul.f32 %v1810_v27, %v2156_v19 }
  0x88   :  { %3264 = vst [vmem:[#allocation11_spill] sm:$0xff] %v2196_v44  ;;  %3265 = vst [vmem:[#allocation12_spill] sm:$0xff] %v2202_v48  ;;  %v2217_v57 = vmul.f32 %v1809_v28, %v2158_v20  ;;  %v2220_v58 = vmul.f32 %v1809_v28, %v2160_v24  ;;  %v2223_v59 = vmul.f32 %v1810_v27, %v2158_v20 }
  0x89   :  { %1068 = vperm.xlu1 %1960, %v998_v45   ;;  %v1853_v60 = vpop.permute.xlu0 %1852  ;;  %v2226_v61 = vmul.f32 %v1810_v27, %v2160_v24  ;;  %v2229_v62 = vmul.f32 %v1803_v53, %v2143_v3  ;;  %v2232_v63 = vmul.f32 %v1803_v53, %v2145_v4  ;;  %v2235_v0 = vmul.f32 %v1804_v52, %v2143_v3 }
  0x8a   :  { %v1814_v1 = vpop.permute.xlu1 %1813  ;;  %v2241_v5 = vmul.f32 %v1804_v52, %v2145_v4  ;;  %v2244_v6 = vmul.f32 %v1803_v53, %v2150_v8  ;;  %v2247_v7 = vmul.f32 %v1803_v53, %v2152_v9  ;;  %v2250_v10 = vmul.f32 %v1804_v52, %v2150_v8 }
  0x8b   :  { %3266 = vst [vmem:[#allocation13_spill] sm:$0xff] %v2229_v62  ;;  %3267 = vst [vmem:[#allocation14_spill] sm:$0xff] %v2232_v63  ;;  %v2253_v11 = vmul.f32 %v1804_v52, %v2152_v9  ;;  %v409_v12 = vmul.f32 %v1826_v55, %v2154_v18  ;;  %v410_v13 = vmul.f32 %v1826_v55, %v2156_v19  ;;  %v1816_v23 = vunpack.i.h.bf16 %v1814_v1 }
  0x8c   :  { %3268 = vst [vmem:[#allocation15_spill] sm:$0xff] %v2235_v0  ;;  %3269 = vst [vmem:[#allocation16_spill] sm:$0xff] %v2241_v5  ;;  %v2258_v14 = vmul.f32 %v1827_v54, %v2154_v18  ;;  %v2261_v15 = vmul.f32 %v1827_v54, %v2156_v19  ;;  %v2264_v16 = vmul.f32 %v1826_v55, %v2158_v20  ;;  %v1815_v25 = vunpack.i.l.bf16 %v1814_v1 }
  0x8d   :  { %3270 = vst [vmem:[#allocation17_spill] sm:$0xff] %v2244_v6  ;;  %3271 = vst [vmem:[#allocation18_spill] sm:$0xff] %v2247_v7  ;;  %v2267_v17 = vmul.f32 %v1826_v55, %v2160_v24  ;;  %v2270_v21 = vmul.f32 %v1827_v54, %v2158_v20  ;;  %1078 = vperm.xlu1 %1960, %v1000_v2   ;;  %v1876_v22 = vpop.permute.xlu0 %1875  ;;  %v1855_v27 = vunpack.i.h.bf16 %v1853_v60  ;;  %v1854_v28 = vunpack.i.l.bf16 %v1853_v60 }
  0x8e   :  { %3272 = vst [vmem:[#allocation19_spill] sm:$0xff] %v2250_v10  ;;  %3273 = vst [vmem:[#allocation20_spill] sm:$0xff] %v2253_v11  ;;  %v2273_v38 = vmul.f32 %v1827_v54, %v2160_v24  ;;  %v1878_v45 = vunpack.i.h.bf16 %v1876_v22  ;;  %v1877_v52 = vunpack.i.l.bf16 %v1876_v22  ;;  %v2275_v53 = vadd.f32 %v409_v12, %v181_v35 }
  0x8f   :  { %3274 = vst [vmem:[#allocation21_spill] sm:$0xff] %v2258_v14  ;;  %3275 = vst [vmem:[#allocation22_spill] sm:$0xff] %v2261_v15  ;;  %v1820_v39 = vpop.permute.xlu1 %1819  ;;  %v2278_v55 = vmul.f32 %v1815_v25, %v2154_v18  ;;  %v2281_v46 = vmul.f32 %v1815_v25, %v2156_v19  ;;  %v2284_v2 = vmul.f32 %v1816_v23, %v2154_v18 }
  0x90   :  { %3276 = vst [vmem:[#allocation23_spill] sm:$0xff] %v2264_v16  ;;  %3277 = vst [vmem:[#allocation24_spill] sm:$0xff] %v2267_v17  ;;  %v2286_v1 = vadd.f32 %v410_v13, %v182_v36  ;;  %v2289_v60 = vmul.f32 %v1816_v23, %v2156_v19  ;;  %v2292_v54 = vmul.f32 %v1815_v25, %v2158_v20 }
  0x91   :  { %3278 = vst [vmem:[#allocation25_spill] sm:$0xff] %v2270_v21  ;;  %3279 = vst [vmem:[#allocation26_spill] sm:$0xff] %v2273_v38  ;;  %v2295_v35 = vmul.f32 %v1815_v25, %v2160_v24  ;;  %v2298_v12 = vmul.f32 %v1816_v23, %v2158_v20  ;;  %v1899_v22 = vpop.permute.xlu0 %1898  ;;  %v2301_v47 = vmul.f32 %v1854_v28, %v2154_v18  ;;  %v1821_v38 = vunpack.i.l.bf16 %v1820_v39 }
  0x92   :  { %3280 = vst [vmem:[#allocation27_spill] sm:$0xff] %v2284_v2  ;;  %3281 = vst [vmem:[#allocation28_spill] sm:$0xff] %v2286_v1  ;;  %v2304_v11 = vmul.f32 %v1854_v28, %v2156_v19  ;;  %v2307_v36 = vmul.f32 %v1855_v27, %v2154_v18  ;;  %v2310_v13 = vmul.f32 %v1855_v27, %v2156_v19  ;;  %v1901_v41 = vunpack.i.h.bf16 %v1899_v22 }
  0x93   :  { %3282 = vst [vmem:[#allocation29_spill] sm:$0xff] %v2289_v60  ;;  %3283 = vst [vmem:[#allocation30_spill] sm:$0xff] %v2298_v12  ;;  %v2313_v10 = vmul.f32 %v1816_v23, %v2160_v24  ;;  %v2316_v25 = vmul.f32 %v1854_v28, %v2158_v20  ;;  %v2319_v5 = vmul.f32 %v1855_v27, %v2158_v20  ;;  %v1830_v0 = vpop.permute.xlu1 %1829  ;;  %v1900_v14 = vunpack.i.l.bf16 %v1899_v22 }
  0x94   :  { %3284 = vst [vmem:[#allocation31_spill] sm:$0xff] %v2301_v47  ;;  %3285 = vst [vmem:[#allocation32_spill] sm:$0xff] %v2304_v11  ;;  %v2322_v47 = vmul.f32 %v1855_v27, %v2160_v24  ;;  %v1822_v11 = vunpack.i.h.bf16 %v1820_v39  ;;  %v2331_v23 = vmul.f32 %v1878_v45, %v2154_v18  ;;  %v2340_v27 = vmul.f32 %v1877_v52, %v2160_v24 }
  0x95   :  { %3286 = vst [vmem:[#allocation33_spill] sm:$0xff] %v2307_v36  ;;  %3287 = vst [vmem:[#allocation34_spill] sm:$0xff] %v2310_v13  ;;  %v2325_v36 = vmul.f32 %v1877_v52, %v2154_v18  ;;  %v2328_v13 = vmul.f32 %v1877_v52, %v2156_v19  ;;  %v2343_v39 = vmul.f32 %v1854_v28, %v2160_v24  ;;  %v1832_v48 = vunpack.i.h.bf16 %v1830_v0 }
  0x96   :  { %3288 = vst [vmem:[#allocation35_spill] sm:$0xff] %v2313_v10  ;;  %3289 = vst [vmem:[#allocation36_spill] sm:$0xff] %v2316_v25  ;;  %v2334_v25 = vmul.f32 %v1878_v45, %v2156_v19  ;;  %v2364_v28 = vmul.f32 %v1822_v11, %v2169_v30  ;;  %v1831_v21 = vunpack.i.l.bf16 %v1830_v0  ;;  %v2373_v15 = vmul.f32 %v1822_v11, %v2171_v31 }
  0x97   :  { %3290 = vst [vmem:[#allocation37_spill] sm:$0xff] %v2319_v5  ;;  %3291 = vst [vmem:[#allocation38_spill] sm:$0xff] %v2322_v47  ;;  %v2337_v5 = vmul.f32 %v1877_v52, %v2158_v20  ;;  %v1922_v47 = vpop.permute.xlu0 %1921  ;;  %v2361_v52 = vmul.f32 %v1821_v38, %v2171_v31  ;;  %v2385_v0 = vmul.f32 %v1832_v48, %v2167_v29 }
  0x98   :  { %3292 = vst [vmem:[#allocation39_spill] sm:$0xff] %v2325_v36  ;;  %3293 = vst [vmem:[#allocation40_spill] sm:$0xff] %v2328_v13  ;;  %v2346_v36 = vmul.f32 %v1821_v38, %v2165_v26  ;;  %v2349_v13 = vmul.f32 %v1821_v38, %v2167_v29  ;;  %v1836_v44 = vpop.permute.xlu1 %1835  ;;  %v1924_v37 = vunpack.i.h.bf16 %v1922_v47  ;;  %v2379_v7 = vmul.f32 %v1831_v21, %v2167_v29 }
  0x99   :  { %3294 = vst [vmem:[#allocation41_spill] sm:$0xff] %v2331_v23  ;;  %3295 = vst [vmem:[#allocation42_spill] sm:$0xff] %v2334_v25  ;;  %v2352_v23 = vmul.f32 %v1822_v11, %v2165_v26  ;;  %v2355_v25 = vmul.f32 %v1822_v11, %v2167_v29  ;;  %v2388_v11 = vmul.f32 %v1831_v21, %v2169_v30 }
  0x9a   :  { %3296 = vst [vmem:[#allocation43_spill] sm:$0xff] %v2337_v5  ;;  %3297 = vst [vmem:[#allocation44_spill] sm:$0xff] %v2340_v27  ;;  %v2358_v5 = vmul.f32 %v1821_v38, %v2169_v30  ;;  %v2367_v27 = vmul.f32 %v1878_v45, %v2158_v20  ;;  %v2376_v38 = vmul.f32 %v1831_v21, %v2165_v26 }
  0x9b   :  { %3298 = vst [vmem:[#allocation45_spill] sm:$0xff] %v2343_v39  ;;  %v2370_v39 = vmul.f32 %v1878_v45, %v2160_v24  ;;  %3301 = vst [vmem:[#allocation48_spill] sm:$0xff] %v2373_v15  ;;  %v1923_v45 = vunpack.i.l.bf16 %v1922_v47  ;;  %v2391_v22 = vmul.f32 %v1831_v21, %v2171_v31  ;;  %v2394_v6 = vmul.f32 %v1832_v48, %v2169_v30 }
  0x9c   :  { %3299 = vst [vmem:[#allocation46_spill] sm:$0xff] %v2367_v27  ;;  %v2382_v27 = vmul.f32 %v1832_v48, %v2165_v26  ;;  %3303 = vst [vmem:[#allocation50_spill] sm:$0xff] %v2385_v0  ;;  %v2397_v63 = vmul.f32 %v1900_v14, %v2154_v18  ;;  %v2400_v62 = vmul.f32 %v1900_v14, %v2156_v19 }
  0x9d   :  { %3300 = vst [vmem:[#allocation47_spill] sm:$0xff] %v2370_v39  ;;  %v1928_v39 = vpop.permute.xlu0 %1927  ;;  %3304 = vst [vmem:[#allocation51_spill] sm:$0xff] %v2394_v6  ;;  %v2403_v47 = vmul.f32 %v1901_v41, %v2154_v18  ;;  %v2406_v10 = vmul.f32 %v1901_v41, %v2156_v19  ;;  %v2409_v12 = vmul.f32 %v1900_v14, %v2158_v20  ;;  %v1842_v17 = vpop.permute.xlu1 %1841 }
  0x9e   :  { %3302 = vst [vmem:[#allocation49_spill] sm:$0xff] %v2382_v27  ;;  %3305 = vst [vmem:[#allocation52_spill] sm:$0xff] %v2397_v63  ;;  %v2412_v21 = vmul.f32 %v1900_v14, %v2160_v24  ;;  %v2415_v6 = vmul.f32 %v1901_v41, %v2158_v20  ;;  %v2418_v63 = vmul.f32 %v1901_v41, %v2160_v24  ;;  %v2447_v43 = vunpack.i.h.bf16 %v1928_v39 }
  0x9f   :  { %3306 = vst [vmem:[#allocation53_spill] sm:$0xff] %v2400_v62  ;;  %3307 = vst [vmem:[#allocation54_spill] sm:$0xff] %v2403_v47  ;;  %v2421_v62 = vmul.f32 %v1923_v45, %v2154_v18  ;;  %v2424_v47 = vmul.f32 %v1923_v45, %v2156_v19  ;;  %v2436_v41 = vmul.f32 %v1923_v45, %v2160_v24  ;;  %v1844_v0 = vunpack.i.h.bf16 %v1842_v17 }
  0xa0   :  { %3308 = vst [vmem:[#allocation55_spill] sm:$0xff] %v2406_v10  ;;  %3309 = vst [vmem:[#allocation56_spill] sm:$0xff] %v2409_v12  ;;  %v2427_v10 = vmul.f32 %v1924_v37, %v2154_v18  ;;  %v2430_v12 = vmul.f32 %v1924_v37, %v2156_v19  ;;  %v1843_v27 = vunpack.i.l.bf16 %v1842_v17 }
  0xa1   :  { %3310 = vst [vmem:[#allocation57_spill] sm:$0xff] %v2412_v21  ;;  %3311 = vst [vmem:[#allocation58_spill] sm:$0xff] %v2415_v6  ;;  %v1933_v14 = vpop.permute.xlu0 %1932  ;;  %v2433_v21 = vmul.f32 %v1923_v45, %v2158_v20  ;;  %v2442_v6 = vmul.f32 %v1924_v37, %v2160_v24 }
  0xa2   :  { %3312 = vst [vmem:[#allocation59_spill] sm:$0xff] %v2418_v63  ;;  %3313 = vst [vmem:[#allocation60_spill] sm:$0xff] %v2421_v62  ;;  %v2439_v63 = vmul.f32 %v1924_v37, %v2158_v20  ;;  %v1837_v62 = vunpack.i.l.bf16 %v1836_v44 }
  0xa3   :  { %3314 = vst [vmem:[#allocation61_spill] sm:$0xff] %v2424_v47  ;;  %3315 = vst [vmem:[#allocation62_spill] sm:$0xff] %v2427_v10  ;;  %v2445_v47 = vmul.f32 %v1832_v48, %v2171_v31  ;;  %v1838_v10 = vunpack.i.h.bf16 %v1836_v44  ;;  %v1934_v48 = vunpack.i.l.bf16 %v1933_v14 }
  0xa4   :  { %3316 = vst [vmem:[#allocation63_spill] sm:$0xff] %v2430_v12  ;;  %3317 = vst [vmem:[#allocation64_spill] sm:$0xff] %v2433_v21  ;;  %v1929_v12 = vunpack.i.l.bf16 %v1928_v39  ;;  %v2449_v21 = vunpack.i.h.bf16 %v1933_v14  ;;  %v2452_v45 = vmul.f32 %v1837_v62, %v2154_v18  ;;  %v2464_v39 = vmul.f32 %v1837_v62, %v2158_v20 }
  0xa5   :  { %3318 = vst [vmem:[#allocation65_spill] sm:$0xff] %v2436_v41  ;;  %3319 = vst [vmem:[#allocation66_spill] sm:$0xff] %v2439_v63  ;;  %v2455_v63 = vmul.f32 %v1837_v62, %v2156_v19  ;;  %v2458_v37 = vmul.f32 %v1838_v10, %v2154_v18  ;;  %v1957_v41 = vpop.permute.xlu0 %1956  ;;  %v2461_v44 = vmul.f32 %v1838_v10, %v2156_v19 }
  0xa6   :  { %3320 = vst [vmem:[#allocation67_spill] sm:$0xff] %v2442_v6  ;;  %3321 = vst [vmem:[#allocation68_spill] sm:$0xff] %v2445_v47  ;;  %v1848_v6 = vpop.permute.xlu1 %1847  ;;  %v2467_v17 = vmul.f32 %v1837_v62, %v2160_v24  ;;  %v2476_v18 = vmul.f32 %v1843_v27, %v2165_v26  ;;  %v2479_v14 = vmul.f32 %v1843_v27, %v2167_v29 }
  0xa7   :  { %3322 = vst [vmem:[#allocation69_spill] sm:$0xff] %v2449_v21  ;;  %3323 = vst [vmem:[#allocation70_spill] sm:$0xff] %v2452_v45  ;;  %v2470_v45 = vmul.f32 %v1838_v10, %v2158_v20  ;;  %v2482_v19 = vmul.f32 %v1844_v0, %v2165_v26  ;;  %v2488_v62 = vmul.f32 %v1843_v27, %v2169_v30 }
  0xa8   :  { %3324 = vst [vmem:[#allocation71_spill] sm:$0xff] %v2455_v63  ;;  %3325 = vst [vmem:[#allocation72_spill] sm:$0xff] %v2458_v37  ;;  %v2473_v63 = vmul.f32 %v1838_v10, %v2160_v24  ;;  %v2491_v20 = vmul.f32 %v1843_v27, %v2171_v31  ;;  %v2494_v24 = vmul.f32 %v1844_v0, %v2169_v30  ;;  %v2499_v37 = vunpack.i.h.bf16 %v1957_v41 }
  0xa9   :  { %3326 = vst [vmem:[#allocation73_spill] sm:$0xff] %v2461_v44  ;;  %3327 = vst [vmem:[#allocation74_spill] sm:$0xff] %v2464_v39  ;;  %v2485_v44 = vmul.f32 %v1844_v0, %v2167_v29  ;;  %v2497_v10 = vmul.f32 %v1844_v0, %v2171_v31  ;;  %v2509_v27 = vmul.f32 %v2447_v43, %v2173_v32 }
  0xaa   :  { %3328 = vst [vmem:[#allocation75_spill] sm:$0xff] %v2467_v17  ;;  %3329 = vst [vmem:[#allocation76_spill] sm:$0xff] %v2470_v45  ;;  %v1849_v45 = vunpack.i.l.bf16 %v1848_v6  ;;  %v2501_v17 = vunpack.i.l.bf16 %v1957_v41  ;;  %v2522_v41 = vmul.f32 %v2447_v43, %v2175_v33 }
  0xab   :  { %3330 = vst [vmem:[#allocation77_spill] sm:$0xff] %v2473_v63  ;;  %3331 = vst [vmem:[#allocation78_spill] sm:$0xff] %v2476_v18  ;;  %v1850_v63 = vunpack.i.h.bf16 %v1848_v6 }
  0xac   :  { %3332 = vst [vmem:[#allocation79_spill] sm:$0xff] %v2479_v14  ;;  %3333 = vst [vmem:[#allocation80_spill] sm:$0xff] %v2482_v19  ;;  %v1963_v19 = vpop.permute.xlu0 %1962  ;;  %v2515_v0 = vmul.f32 %v1849_v45, %v2145_v4 }
  0xad   :  { %3334 = vst [vmem:[#allocation81_spill] sm:$0xff] %v2485_v44  ;;  %3335 = vst [vmem:[#allocation82_spill] sm:$0xff] %v2488_v62  ;;  %v1859_v44 = vpop.permute.xlu1 %1858  ;;  %v2503_v39 = vunpack.i.h.bf16 %v1963_v19  ;;  %v2505_v47 = vunpack.i.l.bf16 %v1963_v19  ;;  %v2518_v6 = vmul.f32 %v1850_v63, %v2143_v3  ;;  %v2525_v19 = vmul.f32 %v1850_v63, %v2145_v4 }
  0xae   :  { %3336 = vst [vmem:[#allocation83_spill] sm:$0xff] %v2491_v20  ;;  %3337 = vst [vmem:[#allocation84_spill] sm:$0xff] %v2494_v24  ;;  %v2512_v24 = vmul.f32 %v1849_v45, %v2143_v3  ;;  %v2564_v20 = vmul.f32 %v1929_v12, %v2184_v40 }
  0xaf   :  { %3338 = vst [vmem:[#allocation85_spill] sm:$0xff] %v2497_v10  ;;  %3339 = vst [vmem:[#allocation86_spill] sm:$0xff] %v2499_v37  ;;  %v2534_v37 = vmul.f32 %v1850_v63, %v2150_v8 }
  0xb0   :  { %3340 = vst [vmem:[#allocation87_spill] sm:$0xff] %v2501_v17  ;;  %3341 = vst [vmem:[#allocation88_spill] sm:$0xff] %v2503_v39  ;;  %v2528_v39 = vmul.f32 %v1849_v45, %v2150_v8  ;;  %v2537_v17 = vmul.f32 %v1850_v63, %v2152_v9  ;;  %v1969_v10 = vpop.permute.xlu0 %1968 }
  0xb1   :  { %3342 = vst [vmem:[#allocation89_spill] sm:$0xff] %v2505_v47  ;;  %3343 = vst [vmem:[#allocation90_spill] sm:$0xff] %v2512_v24  ;;  %v2531_v47 = vmul.f32 %v1849_v45, %v2152_v9  ;;  %v2540_v24 = vmul.f32 %v1929_v12, %v2173_v32  ;;  %v2549_v45 = vmul.f32 %v1934_v48, %v2175_v33  ;;  %v1970_v21 = vunpack.i.l.bf16 %v1969_v10 }
  0xb2   :  { %3344 = vst [vmem:[#allocation91_spill] sm:$0xff] %v2515_v0  ;;  %3345 = vst [vmem:[#allocation92_spill] sm:$0xff] %v2518_v6  ;;  %v1861_v6 = vunpack.i.h.bf16 %v1859_v44  ;;  %v1860_v0 = vunpack.i.l.bf16 %v1859_v44 }
  0xb3   :  { %3346 = vst [vmem:[#allocation93_spill] sm:$0xff] %v2525_v19  ;;  %3347 = vst [vmem:[#allocation94_spill] sm:$0xff] %v2528_v39  ;;  %v2543_v19 = vmul.f32 %v1929_v12, %v2175_v33  ;;  %v2546_v39 = vmul.f32 %v1934_v48, %v2173_v32 }
  0xb4   :  { %3348 = vst [vmem:[#allocation95_spill] sm:$0xff] %v2531_v47  ;;  %3349 = vst [vmem:[#allocation96_spill] sm:$0xff] %v2534_v37  ;;  %v2552_v37 = vmul.f32 %v1929_v12, %v2177_v34  ;;  %v2555_v63 = vmul.f32 %v1860_v0, %v2165_v26  ;;  %v2558_v44 = vmul.f32 %v1860_v0, %v2167_v29  ;;  %v1865_v47 = vpop.permute.xlu1 %1864  ;;  %v1974_v2 = vpop.permute.xlu0 %1973 }
  0xb5   :  { %3350 = vst [vmem:[#allocation97_spill] sm:$0xff] %v2537_v17  ;;  %v2561_v17 = vmul.f32 %v1861_v6, %v2165_v26  ;;  %v2567_v62 = vmul.f32 %v1861_v6, %v2167_v29  ;;  %v2570_v16 = vmul.f32 %v1860_v0, %v2169_v30  ;;  %v2573_v42 = vmul.f32 %v1860_v0, %v2171_v31 }
  0xb6   :  { %3351 = vst [vmem:[#allocation98_spill] sm:$0xff] %v2555_v63  ;;  %3352 = vst [vmem:[#allocation99_spill] sm:$0xff] %v2558_v44  ;;  %v2576_v63 = vmul.f32 %v1861_v6, %v2169_v30  ;;  %v2579_v44 = vmul.f32 %v1861_v6, %v2171_v31  ;;  %v2581_v60 = vunpack.i.h.bf16 %v1865_v47  ;;  %v2583_v12 = vunpack.i.l.bf16 %v1865_v47 }
  0xb7   :  { %3353 = vst [vmem:[#allocation100_spill] sm:$0xff] %v2561_v17  ;;  %3354 = vst [vmem:[#allocation101_spill] sm:$0xff] %v2567_v62  ;;  %v1971_v17 = vunpack.i.h.bf16 %v1969_v10  ;;  %v2586_v62 = vmul.f32 %v1934_v48, %v2177_v34  ;;  %v2593_v0 = vmul.f32 %v2447_v43, %v2177_v34  ;;  %v173_v6 = vmul.f32 %v1970_v21, %v2143_v3 }
  0xb8   :  { %3355 = vst [vmem:[#allocation102_spill] sm:$0xff] %v2570_v16  ;;  %3356 = vst [vmem:[#allocation103_spill] sm:$0xff] %v2573_v42  ;;  %v2589_v16 = vmul.f32 %v1934_v48, %v2184_v40  ;;  %v2604_v48 = vpop.permute.xlu1 %1008  ;;  %v2608_v34 = vmul.f32 %v2447_v43, %v2184_v40  ;;  %v1976_v33 = vunpack.i.h.bf16 %v1974_v2 }
  0xb9   :  { %3357 = vst [vmem:[#allocation104_spill] sm:$0xff] %v2576_v63  ;;  %3358 = vst [vmem:[#allocation105_spill] sm:$0xff] %v2579_v44  ;;  %v174_v44 = vmul.f32 %v1970_v21, %v2145_v4  ;;  %v175_v10 = vmul.f32 %v1971_v17, %v2143_v3  ;;  %v176_v47 = vmul.f32 %v1971_v17, %v2145_v4 }
  0xba   :  { %3359 = vst [vmem:[#allocation106_spill] sm:$0xff] %v2581_v60  ;;  %3360 = vst [vmem:[#allocation107_spill] sm:$0xff] %v2583_v12  ;;  %v205_v63 = vmul.f32 %v1970_v21, %v2150_v8  ;;  %v206_v60 = vmul.f32 %v1970_v21, %v2152_v9  ;;  %v2602_v42 = vmul.f32 %v1971_v17, %v2150_v8  ;;  %v1975_v12 = vunpack.i.l.bf16 %v1974_v2 }
  0xbb   :  { %3361 = vst [vmem:[#allocation108_spill] sm:$0xff] %v2593_v0  ;;  %v467_v32 = vadd.f32 %v2211_v51, %v175_v10  ;;  %v468_v14 = vadd.f32 %v2214_v56, %v176_v47  ;;  %v2613_v1 = vmul.f32 %v1971_v17, %v2152_v9  ;;  %v465_v21 = vadd.f32 %v2205_v49, %v173_v6 }
  0xbc   :  { %v466_v0 = vadd.f32 %v2208_v50, %v174_v44  ;;  %v497_v15 = vadd.f32 %v2217_v57, %v205_v63  ;;  %v177_v18 = vmul.f32 %v1975_v12, %v2143_v3  ;;  %v178_v43 = vmul.f32 %v1975_v12, %v2145_v4  ;;  %v1871_v57 = vpop.permute.xlu1 %1870 }
  0xbd   :  { %v2621_v40 = vmul.f32 %v1976_v33, %v2143_v3  ;;  %v498_v51 = vadd.f32 %v2220_v58, %v206_v60  ;;  %v2625_v56 = vmul.f32 %v1976_v33, %v2145_v4  ;;  %v209_v2 = vmul.f32 %v1975_v12, %v2150_v8 }
  0xbe   :  { %v210_v49 = vmul.f32 %v1975_v12, %v2152_v9  ;;  %v2630_v50 = vmul.f32 %v1976_v33, %v2150_v8  ;;  %v1873_v17 = vunpack.i.h.bf16 %v1871_v57  ;;  %v1872_v63 = vunpack.i.l.bf16 %v1871_v57 }
  0xbf   :  { %v695_v44 = vadd.f32 %v2352_v23, %v467_v32  ;;  %v696_v6 = vadd.f32 %v2355_v25, %v468_v14  ;;  %v693_v10 = vadd.f32 %v2346_v36, %v465_v21  ;;  %v694_v58 = vadd.f32 %v2349_v13, %v466_v0  ;;  %v1004_v0 = vpop.permute.xlu0 %1003 }
  0xc0   :  { %3362 = vst [vmem:[#allocation109_spill] sm:$0xff] %v2630_v50  ;;  %v469_v60 = vadd.f32 %v2278_v55, %v177_v18  ;;  %v470_v47 = vadd.f32 %v2281_v46, %v178_v43  ;;  %v2639_v12 = vmul.f32 %v1976_v33, %v2152_v9  ;;  %v2642_v50 = vmul.f32 %v1872_v63, %v2143_v3  ;;  %v1882_v55 = vpop.permute.xlu1 %1881 }
  0xc1   :  { %v2645_v57 = vmul.f32 %v1872_v63, %v2145_v4  ;;  %v2648_v32 = vmul.f32 %v1873_v17, %v2143_v3  ;;  %v2651_v36 = vmul.f32 %v1873_v17, %v2145_v4  ;;  %v2654_v13 = vmul.f32 %v1872_v63, %v2150_v8 }
  0xc2   :  { %v2657_v46 = vmul.f32 %v1872_v63, %v2152_v9  ;;  %v2660_v33 = vmul.f32 %v1873_v17, %v2150_v8  ;;  %v923_v25 = vadd.f32 %v2509_v27, %v695_v44  ;;  %v924_v23 = vadd.f32 %v2522_v41, %v696_v6 }
  0xc3   :  { %3363 = vst [vmem:[#allocation110_spill] sm:$0xff] %v2645_v57  ;;  %3364 = vst [vmem:[#allocation111_spill] sm:$0xff] %v2648_v32  ;;  %v921_v18 = vadd.f32 %v2540_v24, %v693_v10  ;;  %v922_v14 = vadd.f32 %v2543_v19, %v694_v58  ;;  %v1884_v21 = vunpack.i.h.bf16 %v1882_v55  ;;  %v1883_v43 = vunpack.i.l.bf16 %v1882_v55 }
  0xc4   :  { %3365 = vst [vmem:[#allocation112_spill] sm:$0xff] %v2651_v36  ;;  %3366 = vst [vmem:[#allocation113_spill] sm:$0xff] %v2654_v13  ;;  %v697_v36 = vadd.f32 %v2376_v38, %v469_v60  ;;  %v698_v63 = vadd.f32 %v2379_v7, %v470_v47  ;;  %v1083_v32 = vadd.f32 %v2604_v48, %v923_v25  ;;  %v1888_v47 = vpop.permute.xlu1 %1887 }
  0xc5   :  { %3367 = vst [vmem:[#allocation114_spill] sm:$0xff] %v2657_v46  ;;  %3368 = vst [vmem:[#allocation115_spill] sm:$0xff] %v2660_v33  ;;  %v1084_v33 = vadd.f32 %v2604_v48, %v924_v23  ;;  %v1081_v46 = vadd.f32 %v1004_v0, %v921_v18  ;;  %v1082_v13 = vadd.f32 %v1004_v0, %v922_v14  ;;  %v2697_v25 = vunpack.i.h.bf16 %v1888_v47  ;;  %v1014_v14 = vpop.permute.xlu0 %1013 }
  0xc6   :  { %v2671_v27 = vmul.f32 %v1873_v17, %v2152_v9  ;;  %v2674_v24 = vmul.f32 %v1883_v43, %v2165_v26  ;;  %v2677_v41 = vmul.f32 %v1883_v43, %v2167_v29  ;;  %v2680_v19 = vmul.f32 %v1884_v21, %v2165_v26 }
  0xc7   :  { %v2683_v7 = vmul.f32 %v1884_v21, %v2167_v29  ;;  %v2686_v38 = vmul.f32 %v1883_v43, %v2169_v30  ;;  %v2689_v44 = vmul.f32 %v1883_v43, %v2171_v31  ;;  %v2692_v17 = vmul.f32 %v1884_v21, %v2169_v30 }
  0xc8   :  { %3369 = vst [vmem:[#allocation116_spill] sm:$0xff] %v2671_v27  ;;  %v1147_v6 = vmax.f32 %v1083_v32, 0.0  ;;  %v1148_v10 = vmax.f32 %v1084_v33, 0.0  ;;  %v1145_v58 = vmax.f32 %v1081_v46, 0.0  ;;  %v1146_v60 = vmax.f32 %v1082_v13, 0.0 }
  0xc9   :  { %v2695_v55 = vmul.f32 %v1884_v21, %v2171_v31  ;;  %v925_v23 = vadd.f32 %v2546_v39, %v697_v36  ;;  %v926_v18 = vadd.f32 %v2549_v45, %v698_v63  ;;  %v725_v57 = vadd.f32 %v2358_v5, %v497_v15 }
  0xca   :  { %v1212_v43 = vadd.f32 %v1148_v10, %v1147_v6  ;;  %v1209_v27 = vadd.f32 %v1146_v60, %v1145_v58  ;;  %v726_v32 = vadd.f32 %v2361_v52, %v498_v51  ;;  %v501_v13 = vadd.f32 %v2292_v54, %v209_v2  ;;  %v2711_v52 = vpop.permute.xlu1 %1018 }
  0xcb   :  { %3370 = vst [vmem:[#allocation117_spill] sm:$0xff] %v2695_v55  ;;  %v1085_v33 = vadd.f32 %v1014_v14, %v925_v23  ;;  %v1086_v46 = vadd.f32 %v1014_v14, %v926_v18  ;;  %v502_v21 = vadd.f32 %v2295_v35, %v210_v49  ;;  %v2705_v55 = vunpack.i.l.bf16 %v1888_v47  ;;  %v3376_v23 = vld [vmem:[#allocation3_spill] sm:$0xff] }
  0xcc   :  { %1213 = vadd.xlane.f32.xlu1 %v1212_v43  ;;  %1210 = vadd.xlane.f32.xlu0 %v1209_v27  ;;  %v953_v39 = vadd.f32 %v2552_v37, %v725_v57  ;;  %v954_v45 = vadd.f32 %v2564_v20, %v726_v32  ;;  %v499_v36 = vadd.f32 %v2223_v59, %v2602_v42  ;;  %v3371_v59 = vld [vmem:[#allocation78_spill] sm:$0xff] }
  0xcd   :  { %v1149_v5 = vmax.f32 %v1085_v33, 0.0  ;;  %v1150_v15 = vmax.f32 %v1086_v46, 0.0  ;;  %v729_v51 = vadd.f32 %v2388_v11, %v501_v13  ;;  %v730_v54 = vadd.f32 %v2391_v22, %v502_v21  ;;  %v3372_v11 = vld [vmem:[#allocation48_spill] sm:$0xff] }
  0xce   :  { %v1113_v35 = vadd.f32 %v1004_v0, %v953_v39  ;;  %v1114_v2 = vadd.f32 %v1004_v0, %v954_v45  ;;  %v500_v49 = vadd.f32 %v2226_v61, %v2613_v1  ;;  %v727_v37 = vadd.f32 %v2364_v28, %v499_v36  ;;  %v3373_v22 = vld [vmem:[#allocation108_spill] sm:$0xff]  ;;  %v1894_v61 = vpop.permute.xlu1 %1893  ;;  %v3375_v28 = vld [vmem:[#allocation79_spill] sm:$0xff] }
  0xcf   :  { %v1215_v57 = vadd.f32 %v1150_v15, %v1149_v5  ;;  %v957_v20 = vadd.f32 %v2586_v62, %v729_v51  ;;  %v958_v42 = vadd.f32 %v2589_v16, %v730_v54  ;;  %v701_v63 = vadd.f32 %v3371_v59, %v2275_v53  ;;  %v3374_v1 = vld [vmem:[#allocation28_spill] sm:$0xff]  ;;  %v3377_v62 = vld [vmem:[#allocation107_spill] sm:$0xff] }
  0xd0   :  { %v1177_v27 = vmax.f32 %v1113_v35, 0.0  ;;  %v1178_v6 = vmax.f32 %v1114_v2, 0.0  ;;  %v728_v10 = vadd.f32 %v3372_v11, %v500_v49  ;;  %v955_v58 = vadd.f32 %v3373_v22, %v727_v37  ;;  %v3378_v21 = vld [vmem:[#allocation4_spill] sm:$0xff]  ;;  %v1024_v35 = vpop.permute.xlu0 %1023  ;;  %v3385_v59 = vld [vmem:[#allocation27_spill] sm:$0xff]  ;;  %v3387_v22 = vld [vmem:[#allocation69_spill] sm:$0xff] }
  0xd1   :  { %1216 = vadd.xlane.f32.xlu1 %v1215_v57  ;;  %v1117_v0 = vadd.f32 %v1014_v14, %v957_v20  ;;  %v1118_v60 = vadd.f32 %v1014_v14, %v958_v42  ;;  %v702_v47 = vadd.f32 %v3375_v28, %v3374_v1  ;;  %v865_v18 = vmul.f32 %v3377_v62, %v3376_v23 }
  0xd2   :  { %v1257_v16 = vadd.f32 %v1178_v6, %v1177_v27  ;;  %v956_v43 = vadd.f32 %v2608_v34, %v728_v10  ;;  %v1115_v53 = vadd.f32 %v2604_v48, %v955_v58  ;;  %v1896_v32 = vunpack.i.h.bf16 %v1894_v61  ;;  %v1905_v57 = vpop.permute.xlu1 %1904  ;;  %v3386_v6 = vld [vmem:[#allocation29_spill] sm:$0xff] }
  0xd3   :  { %v1181_v33 = vmax.f32 %v1117_v0, 0.0  ;;  %v1182_v46 = vmax.f32 %v1118_v60, 0.0  ;;  %v1895_v13 = vunpack.i.l.bf16 %v1894_v61  ;;  %v866_v39 = vmul.f32 %v3377_v62, %v3378_v21  ;;  %v3388_v60 = vld [vmem:[#allocation9_spill] sm:$0xff]  ;;  %v3389_v61 = vld [vmem:[#allocation23_spill] sm:$0xff] }
  0xd4   :  { %1258 = vadd.xlane.f32.xlu0 %v1257_v16  ;;  %v1116_v14 = vadd.f32 %v2604_v48, %v956_v43  ;;  %v1179_v45 = vmax.f32 %v1115_v53, 0.0  ;;  %v2734_v36 = vmul.f32 %v1896_v32, %v2143_v3  ;;  %v2737_v5 = vmul.f32 %v1896_v32, %v2145_v4  ;;  %v3393_v53 = vld [vmem:[#allocation24_spill] sm:$0xff] }
  0xd5   :  { %v1263_v34 = vadd.f32 %v1182_v46, %v1181_v33  ;;  %v2740_v15 = vmul.f32 %v1895_v13, %v2143_v3  ;;  %v2743_v51 = vmul.f32 %v1895_v13, %v2145_v4  ;;  %v2746_v54 = vmul.f32 %v1895_v13, %v2150_v8  ;;  %v3395_v46 = vld [vmem:[#allocation5_spill] sm:$0xff] }
  0xd6   :  { %3379 = vst [vmem:[#allocation78_spill] sm:$0xff] %v2734_v36  ;;  %3380 = vst [vmem:[#allocation48_spill] sm:$0xff] %v2737_v5  ;;  %v1180_v2 = vmax.f32 %v1116_v14, 0.0  ;;  %v2749_v48 = vmul.f32 %v1895_v13, %v2152_v9  ;;  %v2752_v49 = vmul.f32 %v1896_v32, %v2150_v8  ;;  %v2755_v37 = vmul.f32 %v1896_v32, %v2152_v9  ;;  %v3394_v32 = vld [vmem:[#allocation82_spill] sm:$0xff] }
  0xd7   :  { %3381 = vst [vmem:[#allocation108_spill] sm:$0xff] %v2746_v54  ;;  %1264 = vadd.xlane.f32.xlu1 %v1263_v34  ;;  %v929_v20 = vadd.f32 %v865_v18, %v701_v63  ;;  %v930_v42 = vadd.f32 %v866_v39, %v702_v47  ;;  %v471_v27 = vadd.f32 %v3385_v59, %v2621_v40  ;;  %v3390_v63 = vld [vmem:[#allocation49_spill] sm:$0xff]  ;;  %v3391_v18 = vld [vmem:[#allocation50_spill] sm:$0xff]  ;;  %v3396_v39 = vld [vmem:[#allocation7_spill] sm:$0xff] }
  0xd8   :  { %3382 = vst [vmem:[#allocation28_spill] sm:$0xff] %v2749_v48  ;;  %3383 = vst [vmem:[#allocation79_spill] sm:$0xff] %v2752_v49  ;;  %v472_v11 = vadd.f32 %v3386_v6, %v2625_v56  ;;  %v1260_v10 = vadd.f32 %v1180_v2, %v1179_v45  ;;  %v863_v58 = vmul.f32 %v3387_v22, %v3376_v23  ;;  %v3392_v40 = vld [vmem:[#allocation10_spill] sm:$0xff]  ;;  %v3397_v59 = vld [vmem:[#allocation83_spill] sm:$0xff] }
  0xd9   :  { %3384 = vst [vmem:[#allocation3_spill] sm:$0xff] %v2755_v37  ;;  %v864_v0 = vmul.f32 %v3387_v22, %v3378_v21  ;;  %v505_v1 = vadd.f32 %v3389_v61, %v3388_v60  ;;  %v1089_v28 = vadd.f32 %v1024_v35, %v929_v20  ;;  %v1090_v16 = vadd.f32 %v1024_v35, %v930_v42  ;;  %v1911_v42 = vpop.permute.xlu1 %1910 }
  0xda   :  { %v699_v47 = vadd.f32 %v3390_v63, %v471_v27  ;;  %v700_v43 = vadd.f32 %v3391_v18, %v472_v11  ;;  %1261 = vadd.xlane.f32.xlu0 %v1260_v10  ;;  %v506_v56 = vadd.f32 %v3393_v53, %v3392_v40  ;;  %v897_v13 = vmul.f32 %v3377_v62, %v3395_v46  ;;  %v3398_v63 = vld [vmem:[#allocation109_spill] sm:$0xff]  ;;  %v3399_v18 = vld [vmem:[#allocation30_spill] sm:$0xff] }
  0xdb   :  { %v733_v33 = vadd.f32 %v3394_v32, %v505_v1  ;;  %v898_v14 = vmul.f32 %v3377_v62, %v3396_v39  ;;  %v1153_v45 = vmax.f32 %v1089_v28, 0.0  ;;  %v1154_v34 = vmax.f32 %v1090_v16, 0.0 }
  0xdc   :  { %v927_v2 = vadd.f32 %v863_v58, %v699_v47  ;;  %v928_v20 = vadd.f32 %v864_v0, %v700_v43  ;;  %v734_v27 = vadd.f32 %v3397_v59, %v506_v56  ;;  %v1907_v11 = vunpack.i.h.bf16 %v1905_v57  ;;  %v3401_v59 = vld [vmem:[#allocation51_spill] sm:$0xff] }
  0xdd   :  { %v961_v6 = vadd.f32 %v897_v13, %v733_v33  ;;  %v1906_v10 = vunpack.i.l.bf16 %v1905_v57  ;;  %v1221_v60 = vadd.f32 %v1154_v34, %v1153_v45  ;;  %v503_v40 = vadd.f32 %v3399_v18, %v3398_v63  ;;  %v2799_v13 = vpop.permute.xlu1 %1028  ;;  %v3404_v63 = vld [vmem:[#allocation70_spill] sm:$0xff] }
  0xde   :  { %v1087_v61 = vadd.f32 %v2711_v52, %v927_v2  ;;  %v1088_v1 = vadd.f32 %v2711_v52, %v928_v20  ;;  %v962_v53 = vadd.f32 %v898_v14, %v734_v27  ;;  %v2788_v57 = vmul.f32 %v1907_v11, %v2165_v26  ;;  %v3400_v2 = vld [vmem:[#allocation35_spill] sm:$0xff] }
  0xdf   :  { %v1121_v62 = vadd.f32 %v1024_v35, %v961_v6  ;;  %v2782_v28 = vmul.f32 %v1906_v10, %v2165_v26  ;;  %v2785_v58 = vmul.f32 %v1906_v10, %v2167_v29  ;;  %1222 = vadd.xlane.f32.xlu1 %v1221_v60  ;;  %v2791_v47 = vmul.f32 %v1907_v11, %v2167_v29  ;;  %v3402_v60 = vld [vmem:[#allocation68_spill] sm:$0xff] }
  0xe0   :  { %v1151_v0 = vmax.f32 %v1087_v61, 0.0  ;;  %v1152_v16 = vmax.f32 %v1088_v1, 0.0  ;;  %v1122_v43 = vadd.f32 %v1024_v35, %v962_v53  ;;  %v2794_v32 = vmul.f32 %v1906_v10, %v2169_v30  ;;  %v3403_v1 = vld [vmem:[#allocation13_spill] sm:$0xff]  ;;  %v3406_v53 = vld [vmem:[#allocation71_spill] sm:$0xff] }
  0xe1   :  { %v1185_v56 = vmax.f32 %v1121_v62, 0.0  ;;  %v2797_v33 = vmul.f32 %v1906_v10, %v2171_v31  ;;  %v2802_v45 = vmul.f32 %v1907_v11, %v2169_v30  ;;  %v2805_v34 = vmul.f32 %v1907_v11, %v2171_v31  ;;  %v3405_v11 = vld [vmem:[#allocation14_spill] sm:$0xff] }
  0xe2   :  { %v1218_v14 = vadd.f32 %v1152_v16, %v1151_v0  ;;  %v504_v20 = vadd.f32 %v3400_v2, %v2639_v12  ;;  %v1186_v35 = vmax.f32 %v1122_v43, 0.0  ;;  %v731_v27 = vadd.f32 %v3401_v59, %v503_v40  ;;  %v3407_v2 = vld [vmem:[#allocation98_spill] sm:$0xff]  ;;  %v3408_v59 = vld [vmem:[#allocation99_spill] sm:$0xff] }
  0xe3   :  { %v895_v6 = vmul.f32 %v3387_v22, %v3395_v46  ;;  %v896_v10 = vmul.f32 %v3387_v22, %v3396_v39  ;;  %v477_v18 = vadd.f32 %v3404_v63, %v3403_v1  ;;  %v478_v62 = vadd.f32 %v3406_v53, %v3405_v11  ;;  %v1917_v22 = vpop.permute.xlu1 %1916  ;;  %v3409_v11 = vld [vmem:[#allocation17_spill] sm:$0xff]  ;;  %v3410_v53 = vld [vmem:[#allocation74_spill] sm:$0xff] }
  0xe4   :  { %1219 = vadd.xlane.f32.xlu0 %v1218_v14  ;;  %v732_v61 = vadd.f32 %v3402_v60, %v504_v20  ;;  %v869_v12 = vmul.f32 %v2705_v55, %v3376_v23  ;;  %v1269_v0 = vadd.f32 %v1186_v35, %v1185_v56  ;;  %v870_v16 = vmul.f32 %v2705_v55, %v3378_v21  ;;  %v3411_v35 = vld [vmem:[#allocation18_spill] sm:$0xff] }
  0xe5   :  { %v959_v40 = vadd.f32 %v895_v6, %v731_v27  ;;  %v2823_v43 = vunpack.i.h.bf16 %v1911_v42  ;;  %v705_v20 = vadd.f32 %v3407_v2, %v477_v18  ;;  %v706_v60 = vadd.f32 %v3408_v59, %v478_v62  ;;  %v3412_v27 = vld [vmem:[#allocation75_spill] sm:$0xff]  ;;  %v1034_v62 = vpop.permute.xlu0 %1033  ;;  %v3413_v2 = vld [vmem:[#allocation102_spill] sm:$0xff] }
  0xe6   :  { %v960_v14 = vadd.f32 %v896_v10, %v732_v61  ;;  %v2827_v1 = vunpack.i.l.bf16 %v1911_v42  ;;  %1270 = vadd.xlane.f32.xlu1 %v1269_v0  ;;  %v509_v56 = vadd.f32 %v3410_v53, %v3409_v11  ;;  %v510_v6 = vadd.f32 %v3412_v27, %v3411_v35  ;;  %v3414_v59 = vld [vmem:[#allocation103_spill] sm:$0xff] }
  0xe7   :  { %v1119_v63 = vadd.f32 %v2711_v52, %v959_v40  ;;  %v901_v37 = vmul.f32 %v2705_v55, %v3395_v46  ;;  %v933_v61 = vadd.f32 %v869_v12, %v705_v20  ;;  %v934_v18 = vadd.f32 %v870_v16, %v706_v60  ;;  %v1939_v36 = vpop.permute.xlu1 %1938 }
  0xe8   :  { %v1120_v10 = vadd.f32 %v2711_v52, %v960_v14  ;;  %v902_v42 = vmul.f32 %v2705_v55, %v3396_v39  ;;  %v737_v40 = vadd.f32 %v3413_v2, %v509_v56  ;;  %v738_v49 = vadd.f32 %v3414_v59, %v510_v6 }
  0xe9   :  { %v1183_v0 = vmax.f32 %v1119_v63, 0.0  ;;  %v1919_v11 = vunpack.i.h.bf16 %v1917_v22  ;;  %v1093_v5 = vadd.f32 %v1034_v62, %v933_v61  ;;  %v1094_v35 = vadd.f32 %v1034_v62, %v934_v18  ;;  %v3425_v61 = vld [vmem:[#allocation8_spill] sm:$0xff]  ;;  %v3426_v18 = vld [vmem:[#allocation22_spill] sm:$0xff] }
  0xea   :  { %v1184_v53 = vmax.f32 %v1120_v10, 0.0  ;;  %v1918_v27 = vunpack.i.l.bf16 %v1917_v22  ;;  %v965_v48 = vadd.f32 %v901_v37, %v737_v40  ;;  %v966_v54 = vadd.f32 %v902_v42, %v738_v49  ;;  %v3424_v10 = vld [vmem:[#allocation21_spill] sm:$0xff] }
  0xeb   :  { %v2842_v52 = vmul.f32 %v1919_v11, %v2143_v3  ;;  %v2845_v12 = vmul.f32 %v1919_v11, %v2145_v4  ;;  %v1157_v16 = vmax.f32 %v1093_v5, 0.0  ;;  %v1158_v14 = vmax.f32 %v1094_v35, 0.0  ;;  %v3429_v35 = vld [vmem:[#allocation81_spill] sm:$0xff] }
  0xec   :  { %v1266_v55 = vadd.f32 %v1184_v53, %v1183_v0  ;;  %v2848_v20 = vmul.f32 %v1918_v27, %v2143_v3  ;;  %v1125_v60 = vadd.f32 %v1034_v62, %v965_v48  ;;  %v1126_v63 = vadd.f32 %v1034_v62, %v966_v54  ;;  %v3423_v54 = vld [vmem:[#allocation6_spill] sm:$0xff]  ;;  %v1945_v62 = vpop.permute.xlu1 %1944 }
  0xed   :  { %3415 = vst [vmem:[#allocation107_spill] sm:$0xff] %v2842_v52  ;;  %3416 = vst [vmem:[#allocation4_spill] sm:$0xff] %v2845_v12  ;;  %v2851_v56 = vmul.f32 %v1918_v27, %v2145_v4  ;;  %v2854_v37 = vmul.f32 %v1918_v27, %v2150_v8  ;;  %v1227_v49 = vadd.f32 %v1158_v14, %v1157_v16  ;;  %v3427_v0 = vld [vmem:[#allocation106_spill] sm:$0xff]  ;;  %v1941_v40 = vunpack.i.h.bf16 %v1939_v36  ;;  %v3431_v16 = vld [vmem:[#allocation25_spill] sm:$0xff] }
  0xee   :  { %3417 = vst [vmem:[#allocation27_spill] sm:$0xff] %v2848_v20  ;;  %1267 = vadd.xlane.f32.xlu0 %v1266_v55  ;;  %v2857_v22 = vmul.f32 %v1918_v27, %v2152_v9  ;;  %v2860_v6 = vmul.f32 %v1919_v11, %v2150_v8  ;;  %v2863_v5 = vmul.f32 %v1919_v11, %v2152_v9  ;;  %v1189_v3 = vmax.f32 %v1125_v60, 0.0  ;;  %v3428_v11 = vld [vmem:[#allocation80_spill] sm:$0xff]  ;;  %v3430_v55 = vld [vmem:[#allocation11_spill] sm:$0xff] }
  0xef   :  { %3418 = vst [vmem:[#allocation29_spill] sm:$0xff] %v2851_v56  ;;  %3419 = vst [vmem:[#allocation69_spill] sm:$0xff] %v2854_v37  ;;  %v1190_v48 = vmax.f32 %v1126_v63, 0.0  ;;  %v475_v4 = vadd.f32 %v3424_v10, %v3423_v54  ;;  %v476_v42 = vadd.f32 %v3426_v18, %v3425_v61  ;;  %1228 = vadd.xlane.f32.xlu1 %v1227_v49  ;;  %v1940_v59 = vunpack.i.l.bf16 %v1939_v36  ;;  %v3435_v18 = vld [vmem:[#allocation12_spill] sm:$0xff]  ;;  %v3448_v56 = vld [vmem:[#allocation77_spill] sm:$0xff] }
  0xf0   :  { %3420 = vst [vmem:[#allocation9_spill] sm:$0xff] %v2857_v22  ;;  %3421 = vst [vmem:[#allocation23_spill] sm:$0xff] %v2860_v6  ;;  %v867_v2 = vmul.f32 %v3427_v0, %v3376_v23  ;;  %v868_v8 = vmul.f32 %v3427_v0, %v3378_v21  ;;  %v507_v14 = vadd.f32 %v3431_v16, %v3430_v55  ;;  %v3441_v12 = vld [vmem:[#allocation16_spill] sm:$0xff] }
  0xf1   :  { %3422 = vst [vmem:[#allocation49_spill] sm:$0xff] %v2863_v5  ;;  %v1275_v9 = vadd.f32 %v1190_v48, %v1189_v3  ;;  %v703_v53 = vadd.f32 %v3428_v11, %v475_v4  ;;  %v704_v27 = vadd.f32 %v3429_v35, %v476_v42  ;;  %v2878_v60 = vmul.f32 %v1940_v59, %v2165_v26  ;;  %v3436_v42 = vld [vmem:[#allocation26_spill] sm:$0xff]  ;;  %v3437_v35 = vld [vmem:[#allocation84_spill] sm:$0xff] }
  0xf2   :  { %v2881_v63 = vmul.f32 %v1940_v59, %v2167_v29  ;;  %v2884_v49 = vmul.f32 %v1941_v40, %v2165_v26  ;;  %v2887_v54 = vmul.f32 %v1941_v40, %v2167_v29  ;;  %v2890_v48 = vmul.f32 %v1940_v59, %v2169_v30  ;;  %v3443_v37 = vld [vmem:[#allocation100_spill] sm:$0xff] }
  0xf3   :  { %v931_v36 = vadd.f32 %v867_v2, %v703_v53  ;;  %v932_v3 = vadd.f32 %v868_v8, %v704_v27  ;;  %v2893_v10 = vmul.f32 %v1940_v59, %v2171_v31  ;;  %1276 = vadd.xlane.f32.xlu1 %v1275_v9  ;;  %v2896_v4 = vmul.f32 %v1941_v40, %v2169_v30  ;;  %v1039_v2 = vpop.permute.xlu1 %1038  ;;  %v3438_v27 = vld [vmem:[#allocation85_spill] sm:$0xff] }
  0xf4   :  { %3432 = vst [vmem:[#allocation50_spill] sm:$0xff] %v2887_v54  ;;  %v2899_v61 = vmul.f32 %v1941_v40, %v2171_v31  ;;  %v508_v11 = vadd.f32 %v3436_v42, %v3435_v18  ;;  %v735_v55 = vadd.f32 %v3437_v35, %v507_v14  ;;  %v899_v59 = vmul.f32 %v3427_v0, %v3395_v46  ;;  %v3439_v18 = vld [vmem:[#allocation15_spill] sm:$0xff]  ;;  %v3440_v42 = vld [vmem:[#allocation72_spill] sm:$0xff] }
  0xf5   :  { %3433 = vst [vmem:[#allocation10_spill] sm:$0xff] %v2896_v4  ;;  %v1091_v8 = vadd.f32 %v2799_v13, %v931_v36  ;;  %v1092_v53 = vadd.f32 %v2799_v13, %v932_v3  ;;  %v900_v9 = vmul.f32 %v3427_v0, %v3396_v39  ;;  %v2911_v40 = vunpack.i.h.bf16 %v1945_v62  ;;  %v3442_v3 = vld [vmem:[#allocation73_spill] sm:$0xff] }
  0xf6   :  { %3434 = vst [vmem:[#allocation24_spill] sm:$0xff] %v2899_v61  ;;  %v736_v16 = vadd.f32 %v3438_v27, %v508_v11  ;;  %v2913_v5 = vunpack.i.l.bf16 %v1945_v62  ;;  %v479_v14 = vadd.f32 %v3440_v42, %v3439_v18  ;;  %v963_v36 = vadd.f32 %v899_v59, %v735_v55  ;;  %v3444_v18 = vld [vmem:[#allocation101_spill] sm:$0xff]  ;;  %v3446_v55 = vld [vmem:[#allocation76_spill] sm:$0xff] }
  0xf7   :  { %v1155_v35 = vmax.f32 %v1091_v8, 0.0  ;;  %v1156_v6 = vmax.f32 %v1092_v53, 0.0  ;;  %v480_v52 = vadd.f32 %v3442_v3, %v3441_v12  ;;  %v871_v0 = vmul.f32 %v2697_v25, %v3376_v23  ;;  %v1952_v4 = vpop.permute.xlu1 %1951  ;;  %v3445_v53 = vld [vmem:[#allocation19_spill] sm:$0xff]  ;;  %v3447_v3 = vld [vmem:[#allocation20_spill] sm:$0xff] }
  0xf8   :  { %v964_v22 = vadd.f32 %v900_v9, %v736_v16  ;;  %v707_v61 = vadd.f32 %v3443_v37, %v479_v14  ;;  %v872_v11 = vmul.f32 %v2697_v25, %v3378_v21  ;;  %v1123_v27 = vadd.f32 %v2799_v13, %v963_v36 }
  0xf9   :  { %v1224_v62 = vadd.f32 %v1156_v6, %v1155_v35  ;;  %v708_v8 = vadd.f32 %v3444_v18, %v480_v52  ;;  %v511_v59 = vadd.f32 %v3446_v55, %v3445_v53  ;;  %v1954_v9 = vunpack.i.h.bf16 %v1952_v4  ;;  %v3449_v6 = vld [vmem:[#allocation104_spill] sm:$0xff]  ;;  %v3452_v53 = vld [vmem:[#allocation90_spill] sm:$0xff]  ;;  %v3453_v55 = vld [vmem:[#allocation31_spill] sm:$0xff] }
  0xfa   :  { %v1124_v12 = vadd.f32 %v2799_v13, %v964_v22  ;;  %v1953_v16 = vunpack.i.l.bf16 %v1952_v4  ;;  %v935_v37 = vadd.f32 %v871_v0, %v707_v61  ;;  %v1187_v42 = vmax.f32 %v1123_v27, 0.0 }
  0xfb   :  { %1225 = vadd.xlane.f32.xlu0 %v1224_v62  ;;  %v936_v14 = vadd.f32 %v872_v11, %v708_v8  ;;  %v512_v20 = vadd.f32 %v3448_v56, %v3447_v3  ;;  %v739_v35 = vadd.f32 %v3449_v6, %v511_v59  ;;  %v2939_v13 = vmul.f32 %v1954_v9, %v2165_v26 }
  0xfc   :  { %v1188_v36 = vmax.f32 %v1124_v12, 0.0  ;;  %v2933_v54 = vmul.f32 %v1953_v16, %v2165_v26  ;;  %v2936_v52 = vmul.f32 %v1953_v16, %v2167_v29  ;;  %v2942_v22 = vmul.f32 %v1954_v9, %v2167_v29  ;;  %v3451_v26 = vld [vmem:[#allocation105_spill] sm:$0xff] }
  0xfd   :  { %v2945_v4 = vmul.f32 %v1953_v16, %v2169_v30  ;;  %v2948_v56 = vmul.f32 %v1953_v16, %v2171_v31  ;;  %v2951_v61 = vmul.f32 %v1954_v9, %v2169_v30  ;;  %v2954_v11 = vmul.f32 %v1954_v9, %v2171_v31  ;;  %v1044_v16 = vpop.permute.xlu1 %1043  ;;  %v3455_v31 = vld [vmem:[#allocation32_spill] sm:$0xff] }
  0xfe   :  { %v1272_v0 = vadd.f32 %v1188_v36, %v1187_v42  ;;  %v1095_v62 = vadd.f32 %v1039_v2, %v935_v37  ;;  %v1096_v27 = vadd.f32 %v1039_v2, %v936_v14  ;;  %v740_v18 = vadd.f32 %v3451_v26, %v512_v20  ;;  %v3454_v42 = vld [vmem:[#allocation91_spill] sm:$0xff] }
  0xff   :  { %3450 = vst [vmem:[#allocation82_spill] sm:$0xff] %v2954_v11  ;;  %v903_v29 = vmul.f32 %v2697_v25, %v3395_v46  ;;  %v904_v8 = vmul.f32 %v2697_v25, %v3396_v39  ;;  %v481_v59 = vadd.f32 %v3453_v55, %v3452_v53  ;;  %v482_v9 = vadd.f32 %v3455_v31, %v3454_v42  ;;  %v3458_v26 = vld [vmem:[#allocation95_spill] sm:$0xff]  ;;  %v3459_v53 = vld [vmem:[#allocation45_spill] sm:$0xff] }
 0x100   :  { %1273 = vadd.xlane.f32.xlu0 %v1272_v0  ;;  %v1159_v30 = vmax.f32 %v1095_v62, 0.0  ;;  %v1160_v12 = vmax.f32 %v1096_v27, 0.0  ;;  %v873_v37 = vmul.f32 %v2827_v1, %v3376_v23  ;;  %v874_v25 = vmul.f32 %v2827_v1, %v3378_v21  ;;  %v3456_v0 = vld [vmem:[#allocation94_spill] sm:$0xff]  ;;  %v3457_v62 = vld [vmem:[#allocation36_spill] sm:$0xff] }
 0x101   :  { %v967_v20 = vadd.f32 %v903_v29, %v739_v35  ;;  %v968_v14 = vadd.f32 %v904_v8, %v740_v18  ;;  %v709_v3 = vadd.f32 %v2674_v24, %v481_v59  ;;  %v710_v36 = vadd.f32 %v2677_v41, %v482_v9  ;;  %v3461_v9 = vld [vmem:[#allocation33_spill] sm:$0xff] }
 0x102   :  { %v1230_v6 = vadd.f32 %v1160_v12, %v1159_v30  ;;  %v513_v27 = vadd.f32 %v3457_v62, %v3456_v0  ;;  %v514_v55 = vadd.f32 %v3459_v53, %v3458_v26  ;;  %v905_v35 = vmul.f32 %v2827_v1, %v3395_v46  ;;  %v3460_v12 = vld [vmem:[#allocation92_spill] sm:$0xff]  ;;  %v3462_v0 = vld [vmem:[#allocation93_spill] sm:$0xff] }
 0x103   :  { %v1127_v42 = vadd.f32 %v1039_v2, %v967_v20  ;;  %v1128_v31 = vadd.f32 %v1039_v2, %v968_v14  ;;  %v937_v11 = vadd.f32 %v873_v37, %v709_v3  ;;  %v938_v24 = vadd.f32 %v874_v25, %v710_v36  ;;  %v1049_v2 = vpop.permute.xlu1 %1048 }
 0x104   :  { %1231 = vadd.xlane.f32.xlu0 %v1230_v6  ;;  %v741_v18 = vadd.f32 %v2686_v38, %v513_v27  ;;  %v742_v29 = vadd.f32 %v2689_v44, %v514_v55  ;;  %v906_v41 = vmul.f32 %v2827_v1, %v3396_v39  ;;  %v483_v20 = vadd.f32 %v3461_v9, %v3460_v12  ;;  %v3463_v6 = vld [vmem:[#allocation34_spill] sm:$0xff] }
 0x105   :  { %v1191_v8 = vmax.f32 %v1127_v42, 0.0  ;;  %v1192_v59 = vmax.f32 %v1128_v31, 0.0  ;;  %v1097_v30 = vadd.f32 %v1044_v16, %v937_v11  ;;  %v1098_v37 = vadd.f32 %v1044_v16, %v938_v24  ;;  %v3464_v42 = vld [vmem:[#allocation39_spill] sm:$0xff]  ;;  %v3466_v24 = vld [vmem:[#allocation40_spill] sm:$0xff] }
 0x106   :  { %v969_v14 = vadd.f32 %v905_v35, %v741_v18  ;;  %v970_v3 = vadd.f32 %v906_v41, %v742_v29  ;;  %v484_v25 = vadd.f32 %v3463_v6, %v3462_v0  ;;  %v711_v44 = vadd.f32 %v2680_v19, %v483_v20  ;;  %v3465_v35 = vld [vmem:[#allocation110_spill] sm:$0xff]  ;;  %v3467_v20 = vld [vmem:[#allocation96_spill] sm:$0xff] }
 0x107   :  { %v1278_v36 = vadd.f32 %v1192_v59, %v1191_v8  ;;  %v1161_v38 = vmax.f32 %v1097_v30, 0.0  ;;  %v875_v1 = vmul.f32 %v2823_v43, %v3376_v23  ;;  %v1162_v62 = vmax.f32 %v1098_v37, 0.0  ;;  %v1054_v12 = vpop.permute.xlu1 %1053  ;;  %v3468_v37 = vld [vmem:[#allocation37_spill] sm:$0xff]  ;;  %v3470_v0 = vld [vmem:[#allocation38_spill] sm:$0xff] }
 0x108   :  { %v1129_v27 = vadd.f32 %v1044_v16, %v969_v14  ;;  %v1130_v11 = vadd.f32 %v1044_v16, %v970_v3  ;;  %v712_v26 = vadd.f32 %v2683_v7, %v484_v25  ;;  %v876_v53 = vmul.f32 %v2823_v43, %v3378_v21  ;;  %v3469_v3 = vld [vmem:[#allocation97_spill] sm:$0xff] }
 0x109   :  { %1279 = vadd.xlane.f32.xlu0 %v1278_v36  ;;  %v939_v55 = vadd.f32 %v875_v1, %v711_v44  ;;  %v485_v31 = vadd.f32 %v3464_v42, %v2642_v50  ;;  %v486_v18 = vadd.f32 %v3466_v24, %v3465_v35  ;;  %v1233_v19 = vadd.f32 %v1162_v62, %v1161_v38  ;;  %v3471_v1 = vld [vmem:[#allocation117_spill] sm:$0xff]  ;;  %v3475_v35 = vld [vmem:[#allocation44_spill] sm:$0xff] }
 0x10a   :  { %v1193_v29 = vmax.f32 %v1129_v27, 0.0  ;;  %v1194_v41 = vmax.f32 %v1130_v11, 0.0  ;;  %v877_v8 = vmul.f32 %v2913_v5, %v3376_v23  ;;  %v940_v16 = vadd.f32 %v876_v53, %v712_v26  ;;  %v3472_v53 = vld [vmem:[#allocation113_spill] sm:$0xff] }
 0x10b   :  { %v1099_v59 = vadd.f32 %v1049_v2, %v939_v55  ;;  %v713_v7 = vadd.f32 %v2782_v28, %v485_v31  ;;  %v714_v30 = vadd.f32 %v2785_v58, %v486_v18  ;;  %1234 = vadd.xlane.f32.xlu1 %v1233_v19  ;;  %v878_v50 = vmul.f32 %v2913_v5, %v3378_v21  ;;  %v3473_v55 = vld [vmem:[#allocation43_spill] sm:$0xff]  ;;  %v3474_v31 = vld [vmem:[#allocation114_spill] sm:$0xff] }
 0x10c   :  { %v1281_v9 = vadd.f32 %v1194_v41, %v1193_v29  ;;  %v515_v14 = vadd.f32 %v3468_v37, %v3467_v20  ;;  %v516_v6 = vadd.f32 %v3470_v0, %v3469_v3  ;;  %v1100_v25 = vadd.f32 %v1049_v2, %v940_v16  ;;  %v3476_v20 = vld [vmem:[#allocation111_spill] sm:$0xff]  ;;  %v3477_v37 = vld [vmem:[#allocation41_spill] sm:$0xff]  ;;  %v3478_v3 = vld [vmem:[#allocation112_spill] sm:$0xff] }
 0x10d   :  { %v1163_v36 = vmax.f32 %v1099_v59, 0.0  ;;  %v941_v38 = vadd.f32 %v877_v8, %v713_v7  ;;  %v907_v28 = vmul.f32 %v2823_v43, %v3395_v46  ;;  %v942_v44 = vadd.f32 %v878_v50, %v714_v30  ;;  %v3479_v0 = vld [vmem:[#allocation42_spill] sm:$0xff] }
 0x10e   :  { %v743_v58 = vadd.f32 %v2692_v17, %v515_v14  ;;  %v744_v62 = vadd.f32 %v3471_v1, %v516_v6  ;;  %v908_v27 = vmul.f32 %v2823_v43, %v3396_v39  ;;  %v1164_v11 = vmax.f32 %v1100_v25, 0.0 }
 0x10f   :  { %v1101_v26 = vadd.f32 %v1054_v12, %v941_v38  ;;  %v517_v42 = vadd.f32 %v3473_v55, %v3472_v53  ;;  %v518_v24 = vadd.f32 %v3475_v35, %v3474_v31  ;;  %1282 = vadd.xlane.f32.xlu1 %v1281_v9  ;;  %v1102_v18 = vadd.f32 %v1054_v12, %v942_v44  ;;  %v3482_v31 = vld [vmem:[#allocation87_spill] sm:$0xff]  ;;  %v1059_v35 = vpop.permute.xlu0 %1058 }
 0x110   :  { %v971_v19 = vadd.f32 %v907_v28, %v743_v58  ;;  %v972_v29 = vadd.f32 %v908_v27, %v744_v62  ;;  %v909_v17 = vmul.f32 %v2913_v5, %v3395_v46  ;;  %v1236_v41 = vadd.f32 %v1164_v11, %v1163_v36  ;;  %v3480_v62 = vld [vmem:[#allocation52_spill] sm:$0xff]  ;;  %v3481_v11 = vld [vmem:[#allocation53_spill] sm:$0xff] }
 0x111   :  { %v1165_v8 = vmax.f32 %v1101_v26, 0.0  ;;  %v745_v16 = vadd.f32 %v2794_v32, %v517_v42  ;;  %v746_v43 = vadd.f32 %v2797_v33, %v518_v24  ;;  %v1166_v59 = vmax.f32 %v1102_v18, 0.0 }
 0x112   :  { %v1131_v7 = vadd.f32 %v1049_v2, %v971_v19  ;;  %v1132_v30 = vadd.f32 %v1049_v2, %v972_v29  ;;  %v910_v50 = vmul.f32 %v2913_v5, %v3396_v39  ;;  %1237 = vadd.xlane.f32.xlu0 %v1236_v41  ;;  %v487_v14 = vadd.f32 %v3477_v37, %v3476_v20 }
 0x113   :  { %v973_v9 = vadd.f32 %v909_v17, %v745_v16  ;;  %v488_v6 = vadd.f32 %v3479_v0, %v3478_v3  ;;  %v879_v25 = vmul.f32 %v2911_v40, %v3376_v23  ;;  %v1239_v32 = vadd.f32 %v1166_v59, %v1165_v8  ;;  %v3484_v17 = vld [vmem:[#allocation46_spill] sm:$0xff]  ;;  %v3485_v8 = vld [vmem:[#allocation116_spill] sm:$0xff]  ;;  %v3486_v16 = vld [vmem:[#allocation47_spill] sm:$0xff] }
 0x114   :  { %v1195_v36 = vmax.f32 %v1131_v7, 0.0  ;;  %v1196_v33 = vmax.f32 %v1132_v30, 0.0  ;;  %v974_v38 = vadd.f32 %v910_v50, %v746_v43  ;;  %v715_v2 = vadd.f32 %v2788_v57, %v487_v14  ;;  %v3487_v0 = vld [vmem:[#allocation108_spill] sm:$0xff] }
 0x115   :  { %v1133_v28 = vadd.f32 %v1054_v12, %v973_v9  ;;  %v716_v5 = vadd.f32 %v2791_v47, %v488_v6  ;;  %v880_v44 = vmul.f32 %v2911_v40, %v3378_v21  ;;  %1240 = vadd.xlane.f32.xlu1 %v1239_v32  ;;  %v489_v27 = vadd.f32 %v3480_v62, %v2740_v15  ;;  %v1064_v15 = vpop.permute.xlu1 %1063  ;;  %v3488_v6 = vld [vmem:[#allocation56_spill] sm:$0xff]  ;;  %v3491_v62 = vld [vmem:[#allocation78_spill] sm:$0xff] }
 0x116   :  { %v1284_v58 = vadd.f32 %v1196_v33, %v1195_v36  ;;  %v1134_v1 = vadd.f32 %v1054_v12, %v974_v38  ;;  %v490_v26 = vadd.f32 %v3481_v11, %v2743_v51  ;;  %v943_v55 = vadd.f32 %v879_v25, %v715_v2  ;;  %v3483_v51 = vld [vmem:[#allocation115_spill] sm:$0xff]  ;;  %v3489_v33 = vld [vmem:[#allocation28_spill] sm:$0xff]  ;;  %v3490_v38 = vld [vmem:[#allocation57_spill] sm:$0xff] }
 0x117   :  { %v1197_v53 = vmax.f32 %v1133_v28, 0.0  ;;  %v944_v42 = vadd.f32 %v880_v44, %v716_v5  ;;  %v881_v57 = vmul.f32 %v3482_v31, %v3376_v23  ;;  %v717_v24 = vadd.f32 %v2878_v60, %v489_v27  ;;  %v3492_v27 = vld [vmem:[#allocation54_spill] sm:$0xff] }
 0x118   :  { %1285 = vadd.xlane.f32.xlu0 %v1284_v58  ;;  %v1198_v47 = vmax.f32 %v1134_v1, 0.0  ;;  %v718_v18 = vadd.f32 %v2881_v63, %v490_v26  ;;  %v882_v12 = vmul.f32 %v3482_v31, %v3378_v21  ;;  %v1103_v19 = vadd.f32 %v1059_v35, %v943_v55 }
 0x119   :  { %v1104_v29 = vadd.f32 %v1059_v35, %v944_v42  ;;  %v519_v41 = vadd.f32 %v3484_v17, %v3483_v51  ;;  %v520_v43 = vadd.f32 %v3486_v16, %v3485_v8  ;;  %v945_v7 = vadd.f32 %v881_v57, %v717_v24  ;;  %v3493_v42 = vld [vmem:[#allocation48_spill] sm:$0xff]  ;;  %v3494_v57 = vld [vmem:[#allocation55_spill] sm:$0xff]  ;;  %v3496_v51 = vld [vmem:[#allocation50_spill] sm:$0xff] }
 0x11a   :  { %v1287_v59 = vadd.f32 %v1198_v47, %v1197_v53  ;;  %v946_v30 = vadd.f32 %v882_v12, %v718_v18  ;;  %v911_v60 = vmul.f32 %v2911_v40, %v3395_v46  ;;  %v1167_v50 = vmax.f32 %v1103_v19, 0.0  ;;  %v3495_v12 = vld [vmem:[#allocation86_spill] sm:$0xff]  ;;  %v3497_v16 = vld [vmem:[#allocation27_spill] sm:$0xff] }
 0x11b   :  { %v1168_v63 = vmax.f32 %v1104_v29, 0.0  ;;  %v747_v9 = vadd.f32 %v2802_v45, %v519_v41  ;;  %v748_v20 = vadd.f32 %v2805_v34, %v520_v43  ;;  %v1105_v37 = vadd.f32 %v1064_v15, %v945_v7  ;;  %v3498_v43 = vld [vmem:[#allocation60_spill] sm:$0xff]  ;;  %v3499_v7 = vld [vmem:[#allocation29_spill] sm:$0xff] }
 0x11c   :  { %1288 = vadd.xlane.f32.xlu1 %v1287_v59  ;;  %v1106_v14 = vadd.f32 %v1064_v15, %v946_v30  ;;  %v912_v3 = vmul.f32 %v2911_v40, %v3396_v39  ;;  %v521_v25 = vadd.f32 %v3488_v6, %v3487_v0  ;;  %v522_v28 = vadd.f32 %v3490_v38, %v3489_v33  ;;  %v3500_v30 = vld [vmem:[#allocation61_spill] sm:$0xff]  ;;  %v3504_v33 = vld [vmem:[#allocation3_spill] sm:$0xff] }
 0x11d   :  { %v1242_v32 = vadd.f32 %v1168_v63, %v1167_v50  ;;  %v975_v36 = vadd.f32 %v911_v60, %v747_v9  ;;  %v913_v2 = vmul.f32 %v3482_v31, %v3395_v46  ;;  %v1169_v45 = vmax.f32 %v1105_v37, 0.0  ;;  %v3501_v9 = vld [vmem:[#allocation89_spill] sm:$0xff]  ;;  %v3505_v38 = vld [vmem:[#allocation59_spill] sm:$0xff] }
 0x11e   :  { %v1170_v5 = vmax.f32 %v1106_v14, 0.0  ;;  %v976_v34 = vadd.f32 %v912_v3, %v748_v20  ;;  %v749_v44 = vadd.f32 %v2890_v48, %v521_v25  ;;  %v750_v40 = vadd.f32 %v2893_v10, %v522_v28  ;;  %v1069_v10 = vpop.permute.xlu1 %1068  ;;  %v3502_v25 = vld [vmem:[#allocation79_spill] sm:$0xff] }
 0x11f   :  { %1243 = vadd.xlane.f32.xlu0 %v1242_v32  ;;  %v1135_v58 = vadd.f32 %v1059_v35, %v975_v36  ;;  %v914_v1 = vmul.f32 %v3482_v31, %v3396_v39  ;;  %v491_v11 = vadd.f32 %v3492_v27, %v3491_v62  ;;  %v492_v47 = vadd.f32 %v3494_v57, %v3493_v42  ;;  %v3503_v32 = vld [vmem:[#allocation58_spill] sm:$0xff]  ;;  %v3510_v42 = vld [vmem:[#allocation9_spill] sm:$0xff] }
 0x120   :  { %v1245_v26 = vadd.f32 %v1170_v5, %v1169_v45  ;;  %v1136_v53 = vadd.f32 %v1059_v35, %v976_v34  ;;  %v977_v55 = vadd.f32 %v913_v2, %v749_v44  ;;  %v883_v19 = vmul.f32 %v3495_v12, %v3376_v23  ;;  %v3511_v57 = vld [vmem:[#allocation65_spill] sm:$0xff] }
 0x121   :  { %v1199_v24 = vmax.f32 %v1135_v58, 0.0  ;;  %v978_v18 = vadd.f32 %v914_v1, %v750_v40  ;;  %v719_v48 = vadd.f32 %v2884_v49, %v491_v11  ;;  %v720_v17 = vadd.f32 %v3496_v51, %v492_v47  ;;  %v3506_v58 = vld [vmem:[#allocation10_spill] sm:$0xff]  ;;  %v3507_v1 = vld [vmem:[#allocation24_spill] sm:$0xff] }
 0x122   :  { %1246 = vadd.xlane.f32.xlu1 %v1245_v26  ;;  %v1200_v29 = vmax.f32 %v1136_v53, 0.0  ;;  %v1137_v31 = vadd.f32 %v1064_v15, %v977_v55  ;;  %v884_v35 = vmul.f32 %v3495_v12, %v3378_v21  ;;  %v493_v59 = vadd.f32 %v3498_v43, %v3497_v16  ;;  %v3508_v26 = vld [vmem:[#allocation69_spill] sm:$0xff]  ;;  %v3509_v53 = vld [vmem:[#allocation64_spill] sm:$0xff]  ;;  %v3513_v16 = vld [vmem:[#allocation62_spill] sm:$0xff] }
 0x123   :  { %v1138_v41 = vadd.f32 %v1064_v15, %v978_v18  ;;  %v947_v8 = vadd.f32 %v883_v19, %v719_v48  ;;  %v494_v49 = vadd.f32 %v3500_v30, %v3499_v7  ;;  %v885_v20 = vmul.f32 %v3501_v9, %v3376_v23  ;;  %v3514_v30 = vld [vmem:[#allocation4_spill] sm:$0xff] }
 0x124   :  { %v1290_v60 = vadd.f32 %v1200_v29, %v1199_v24  ;;  %v1201_v50 = vmax.f32 %v1137_v31, 0.0  ;;  %v948_v63 = vadd.f32 %v884_v35, %v720_v17  ;;  %v721_v3 = vadd.f32 %v2933_v54, %v493_v59  ;;  %v1074_v54 = vpop.permute.xlu0 %1073 }
 0x125   :  { %v1202_v37 = vmax.f32 %v1138_v41, 0.0  ;;  %v1107_v14 = vadd.f32 %v1069_v10, %v947_v8  ;;  %v722_v0 = vadd.f32 %v2936_v52, %v494_v49  ;;  %v886_v6 = vmul.f32 %v3501_v9, %v3378_v21  ;;  %v3512_v8 = vld [vmem:[#allocation107_spill] sm:$0xff] }
 0x126   :  { %1291 = vadd.xlane.f32.xlu0 %v1290_v60  ;;  %v1108_v15 = vadd.f32 %v1069_v10, %v948_v63  ;;  %v523_v36 = vadd.f32 %v3503_v32, %v3502_v25  ;;  %v524_v28 = vadd.f32 %v3505_v38, %v3504_v33  ;;  %v949_v5 = vadd.f32 %v885_v20, %v721_v3  ;;  %v3515_v49 = vld [vmem:[#allocation63_spill] sm:$0xff]  ;;  %v3518_v32 = vld [vmem:[#allocation66_spill] sm:$0xff] }
 0x127   :  { %v1293_v2 = vadd.f32 %v1202_v37, %v1201_v50  ;;  %v1171_v45 = vmax.f32 %v1107_v14, 0.0  ;;  %v915_v34 = vmul.f32 %v3495_v12, %v3395_v46  ;;  %v950_v52 = vadd.f32 %v886_v6, %v722_v0  ;;  %v3516_v50 = vld [vmem:[#allocation88_spill] sm:$0xff]  ;;  %v1079_v14 = vpop.permute.xlu1 %1078  ;;  %v3517_v25 = vld [vmem:[#allocation23_spill] sm:$0xff] }
 0x128   :  { %v1172_v44 = vmax.f32 %v1108_v15, 0.0  ;;  %v751_v40 = vadd.f32 %v3506_v58, %v523_v36  ;;  %v752_v62 = vadd.f32 %v3507_v1, %v524_v28  ;;  %v1109_v27 = vadd.f32 %v1074_v54, %v949_v5  ;;  %v3520_v33 = vld [vmem:[#allocation67_spill] sm:$0xff] }
 0x129   :  { %1294 = vadd.xlane.f32.xlu1 %v1293_v2  ;;  %v916_v11 = vmul.f32 %v3495_v12, %v3396_v39  ;;  %v525_v55 = vadd.f32 %v3509_v53, %v3508_v26  ;;  %v526_v47 = vadd.f32 %v3511_v57, %v3510_v42  ;;  %v1110_v18 = vadd.f32 %v1074_v54, %v950_v52  ;;  %v1977_v42 = vld [vmem:[%s3234_s3 + $0x38] sm:$0xff]  }
 0x12a   :  { %v1248_v24 = vadd.f32 %v1172_v44, %v1171_v45  ;;  %v979_v48 = vadd.f32 %v915_v34, %v751_v40  ;;  %v917_v19 = vmul.f32 %v3501_v9, %v3395_v46  ;;  %v1173_v29 = vmax.f32 %v1109_v27, 0.0 }
 0x12b   :  { %v980_v31 = vadd.f32 %v916_v11, %v752_v62  ;;  %v753_v51 = vadd.f32 %v2945_v4, %v525_v55  ;;  %v754_v17 = vadd.f32 %v2948_v56, %v526_v47  ;;  %v1174_v12 = vmax.f32 %v1110_v18, 0.0  ;;  %v1979_v47 = vld [vmem:[%s3234_s3 + $0x28] sm:$0xff]   ;;  %v1981_v18 = vld [vmem:[%s3234_s3 + $0x18] sm:$0xff]  }
 0x12c   :  { %1249 = vadd.xlane.f32.xlu0 %v1248_v24  ;;  %v1139_v35 = vadd.f32 %v1069_v10, %v979_v48  ;;  %v918_v41 = vmul.f32 %v3501_v9, %v3396_v39  ;;  %v495_v43 = vadd.f32 %v3513_v16, %v3512_v8  ;;  %v496_v60 = vadd.f32 %v3515_v49, %v3514_v30  ;;  %v1980_v24 = vld [vmem:[%s3234_s3 + $0x20] sm:$0xff]   ;;  %v1982_v48 = vld [vmem:[%s3234_s3 + $0x10] sm:$0xff]  }
 0x12d   :  { %v1140_v59 = vadd.f32 %v1069_v10, %v980_v31  ;;  %v981_v7 = vadd.f32 %v917_v19, %v753_v51  ;;  %v887_v63 = vmul.f32 %v3516_v50, %v3376_v23  ;;  %v1251_v4 = vadd.f32 %v1174_v12, %v1173_v29  ;;  %v3519_v23 = vld [vmem:[#allocation49_spill] sm:$0xff]  ;;  %v1983_v19 = vld [vmem:[%s3234_s3 + $0x8] sm:$0xff]   ;;  %v1984_v29 = vld [vmem:[%s3234_s3] sm:$0xff]  }
 0x12e   :  { %v1203_v20 = vmax.f32 %v1139_v35, 0.0  ;;  %v982_v56 = vadd.f32 %v918_v41, %v754_v17  ;;  %v723_v37 = vadd.f32 %v2939_v13, %v495_v43  ;;  %v724_v9 = vadd.f32 %v2942_v22, %v496_v60 }
 0x12f   :  { %v1204_v3 = vmax.f32 %v1140_v59, 0.0  ;;  %v1141_v0 = vadd.f32 %v1074_v54, %v981_v7  ;;  %v888_v10 = vmul.f32 %v3516_v50, %v3378_v21  ;;  %1252 = vadd.xlane.f32.xlu1 %v1251_v4  ;;  %v527_v36 = vadd.f32 %v3518_v32, %v3517_v25  ;;  %v3521_v21 = vld [vmem:[#allocation82_spill] sm:$0xff] }
 0x130   :  { %v1142_v15 = vadd.f32 %v1074_v54, %v982_v56  ;;  %v951_v6 = vadd.f32 %v887_v63, %v723_v37  ;;  %v528_v38 = vadd.f32 %v3520_v33, %v3519_v23  ;;  %v919_v45 = vmul.f32 %v3516_v50, %v3395_v46 }
 0x131   :  { %v1296_v28 = vadd.f32 %v1204_v3, %v1203_v20  ;;  %v1205_v2 = vmax.f32 %v1141_v0, 0.0  ;;  %v952_v13 = vadd.f32 %v888_v10, %v724_v9  ;;  %v755_v34 = vadd.f32 %v2951_v61, %v527_v36 }
 0x132   :  { %v1206_v5 = vmax.f32 %v1142_v15, 0.0  ;;  %v1111_v22 = vadd.f32 %v1079_v14, %v951_v6  ;;  %v756_v44 = vadd.f32 %v3521_v21, %v528_v38  ;;  %v920_v52 = vmul.f32 %v3516_v50, %v3396_v39  ;;  %v1978_v39 = vld [vmem:[%s3234_s3 + $0x30] sm:$0xff]  }
 0x133   :  { %1297 = vadd.xlane.f32.xlu0 %v1296_v28  ;;  %v1112_v54 = vadd.f32 %v1079_v14, %v952_v13  ;;  %v983_v1 = vadd.f32 %v919_v45, %v755_v34  ;;  %v1989_v57 = vmov 0.0   ;;  %v3522_v56 = vlaneseq  ;;  %v3523_v45 = vld [vmem:[#allocation2_spill] sm:$0xff] }
 0x134   :  { %v1299_v58 = vadd.f32 %v1206_v5, %v1205_v2  ;;  %v1175_v40 = vmax.f32 %v1111_v22, 0.0  ;;  %v984_v27 = vadd.f32 %v920_v52, %v756_v44  ;;  %1768 = vmatprep.subr.bf16.mxu0 %v1989_v57  ;;  %1784 = vmatprep.mubr.msk.bf16.mxu0 %vm1990_vm0, %v1989_v57  ;;  %vm1614_vm0 = vcmask 1041409  }
 0x135   :  { %v1176_v62 = vmax.f32 %v1112_v54, 0.0  ;;  %v1143_v11 = vadd.f32 %v1079_v14, %v983_v1  ;;  %1769 = vmatpush3.bf16.msra.mxu0 %v1977_v42  ;;  %v3152_v37 = vand.u32 127, %v3522_v56 }
 0x136   :  { %1300 = vadd.xlane.f32.xlu1 %v1299_v58  ;;  %v1144_v46 = vadd.f32 %v1079_v14, %v984_v27  ;;  %1770 = vmatprep.subr.bf16.mxu0 %v1989_v57 }
 0x137   :  { %v1254_v26 = vadd.f32 %v1176_v62, %v1175_v40  ;;  %v1207_v53 = vmax.f32 %v1143_v11, 0.0  ;;  %v1430_v25 = vadd.s32 4294967288, %v3152_v37  ;;  %v1437_v38 = vadd.s32 4294967280, %v3152_v37 }
 0x138   :  { %v1208_v55 = vmax.f32 %v1144_v46, 0.0  ;;  %v1444_v28 = vadd.s32 4294967272, %v3152_v37  ;;  %v1428_v5 = vsub.s32 %v3152_v37, %v3523_v45  ;;  %v1451_v34 = vadd.s32 4294967264, %v3152_v37 }
 0x139   :  { %1255 = vadd.xlane.f32.xlu0 %v1254_v26  ;;  %1771 = vmatpush3.bf16.msra.mxu0 %v1978_v39  ;;  %v1433_v44 = vsub.s32 %v1430_v25, %v3523_v45  ;;  %v1458_v52 = vadd.s32 4294967256, %v3152_v37  ;;  %v1440_v26 = vsub.s32 %v1437_v38, %v3523_v45  ;;  %v1465_v39 = vadd.s32 4294967248, %v3152_v37 }
 0x13a   :  { %v1302_v61 = vadd.f32 %v1208_v55, %v1207_v53  ;;  %1772 = vmatprep.subr.bf16.mxu0 %v1989_v57  ;;  %v1447_v46 = vsub.s32 %v1444_v28, %v3523_v45  ;;  %v1454_v42 = vsub.s32 %v1451_v34, %v3523_v45 }
 0x13d   :  { %1303 = vadd.xlane.f32.xlu0 %v1302_v61  ;;  %1773 = vmatpush3.bf16.msra.mxu0 %v1979_v47 }
 0x13e   :  { %1774 = vmatprep.subr.bf16.mxu0 %v1989_v57 }
 0x141   :  { %1775 = vmatpush3.bf16.msra.mxu0 %v1980_v24  ;;  %v1461_v24 = vsub.s32 %v1458_v52, %v3523_v45 }
 0x142   :  { %1776 = vmatprep.subr.bf16.mxu0 %v1989_v57 }
 0x145   :  { %1777 = vmatpush3.bf16.msra.mxu0 %v1981_v18 }
 0x146   :  { %1778 = vmatprep.subr.bf16.mxu0 %v1989_v57 }
 0x149   :  { %1779 = vmatpush3.bf16.msra.mxu0 %v1982_v48  ;;  %v1472_v48 = vadd.s32 4294967240, %v3152_v37 }
 0x14a   :  { %1780 = vmatprep.subr.bf16.mxu0 %v1989_v57 }
 0x14d   :  { %1781 = vmatpush3.bf16.msra.mxu0 %v1983_v19 }
 0x14e   :  { %1782 = vmatprep.subr.bf16.mxu0 %v1989_v57 }
 0x151   :  { %1783 = vmatpush3.bf16.msra.mxu0 %v1984_v29 }
 0x155   :  { %v1211_v31 = vpop.xlane.xlu0 %1210  ;;  %v1214_v51 = vpop.xlane.xlu1 %1213 }
 0x156   :  { %v1306_v20 = vmul.f32 0.00390625, %v1214_v51  ;;  %v1305_v14 = vmul.f32 0.00390625, %v1211_v31 }
 0x158   :  { %v1337_v32 = vpack.c.bf16 %v1306_v20, %v1305_v14  ;;  %v1468_v14 = vsub.s32 %v1465_v39, %v3523_v45 }
 0x15a   :  { %v1217_v12 = vpop.xlane.xlu1 %1216  ;;  %v1392_v54 = vunpack.c.l.b16 %v1337_v32  ;;  %v1393_v1 = vunpack.c.h.b16 %v1337_v32 }
 0x15b   :  { %v1307_v36 = vmul.f32 0.00390625, %v1217_v12 }
 0x15c   :  { %v1429_v47 = vrot.slane %v1392_v54, %v1428_v5  ;;  %v1434_v29 = vrot.slane %v1393_v1, %v1433_v44  ;;  %v1493_v54 = vadd.s32 4294967216, %v3152_v37 }
 0x15d   :  { %v1259_v17 = vpop.xlane.xlu0 %1258 }
 0x15e   :  { %v1321_v15 = vmul.f32 0.00390625, %v1259_v17 }
 0x160   :  { %v1265_v41 = vpop.xlane.xlu1 %1264 }
 0x161   :  { %v1323_v23 = vmul.f32 0.00390625, %v1265_v41 }
 0x163   :  { %v1262_v35 = vpop.xlane.xlu0 %1261 }
 0x164   :  { %v1322_v0 = vmul.f32 0.00390625, %v1262_v35 }
 0x166   :  { %v1345_v33 = vpack.c.bf16 %v1322_v0, %v1321_v15  ;;  %v1475_v0 = vsub.s32 %v1472_v48, %v3523_v45  ;;  %v1486_v15 = vadd.s32 4294967224, %v3152_v37 }
 0x168   :  { %v1223_v16 = vpop.xlane.xlu1 %1222  ;;  %v1408_v62 = vunpack.c.l.b16 %v1345_v33  ;;  %v1409_v27 = vunpack.c.h.b16 %v1345_v33 }
 0x169   :  { %v1309_v11 = vmul.f32 0.00390625, %v1223_v16 }
 0x16a   :  { %v1538_v31 = vrot.slane %v1408_v62, %v1428_v5  ;;  %v1542_v51 = vrot.slane %v1409_v27, %v1433_v44 }
 0x16d   :  { %v1220_v8 = vpop.xlane.xlu0 %1219 }
 0x16e   :  { %v1308_v9 = vmul.f32 0.00390625, %v1220_v8  ;;  %v1479_v8 = vadd.s32 4294967232, %v3152_v37 }
 0x16f   :  { %v1271_v59 = vpop.xlane.xlu1 %1270 }
 0x170   :  { %v1338_v2 = vpack.c.bf16 %v1308_v9, %v1307_v36  ;;  %v1325_v55 = vmul.f32 0.00390625, %v1271_v59  ;;  %v1543_v9 = vsel %vm1435_vm1, %v1542_v51, %v1538_v31  ;;  %v1482_v44 = vsub.s32 %v1479_v8, %v3523_v45 }
 0x172   :  { %v1394_v53 = vunpack.c.l.b16 %v1338_v2  ;;  %v1395_v12 = vunpack.c.h.b16 %v1338_v2 }
 0x174   :  { %v1441_v35 = vrot.slane %v1394_v53, %v1440_v26  ;;  %v1448_v25 = vrot.slane %v1395_v12, %v1447_v46 }
 0x177   :  { %v1268_v43 = vpop.xlane.xlu0 %1267 }
 0x178   :  { %v3145_v30 = vpop.xlane.xlu1 %1228  ;;  %v1324_v6 = vmul.f32 0.00390625, %v1268_v43 }
 0x17a   :  { %v1346_v22 = vpack.c.bf16 %v1324_v6, %v1323_v23 }
 0x17c   :  { %v3147_v50 = vpop.xlane.xlu1 %1276  ;;  %v1410_v61 = vunpack.c.l.b16 %v1346_v22  ;;  %v1411_v43 = vunpack.c.h.b16 %v1346_v22 }
 0x17d   :  { %v1327_v20 = vmul.f32 0.00390625, %v3147_v50 }
 0x17e   :  { %v1547_v59 = vrot.slane %v1410_v61, %v1440_v26  ;;  %v1552_v23 = vrot.slane %v1411_v43, %v1447_v46 }
 0x180   :  { %v1548_v36 = vsel %vm1442_vm2, %v1547_v59, %v1543_v9 }
 0x181   :  { %v1553_v27 = vsel %vm1449_vm3, %v1552_v23, %v1548_v36  ;;  %v1521_v23 = vadd.s32 4294967184, %v3152_v37 }
 0x184   :  { %v1226_v7 = vpop.xlane.xlu0 %1225 }
 0x185   :  { %v1310_v21 = vmul.f32 0.00390625, %v1226_v7  ;;  %v1311_v7 = vmul.f32 0.00390625, %v3145_v30 }
 0x187   :  { %v1339_v57 = vpack.c.bf16 %v1310_v21, %v1309_v11 }
 0x189   :  { %v1274_v49 = vpop.xlane.xlu0 %1273  ;;  %v1397_v33 = vunpack.c.h.b16 %v1339_v57 }
 0x18a   :  { %v1326_v58 = vmul.f32 0.00390625, %v1274_v49  ;;  %v1396_v49 = vunpack.c.l.b16 %v1339_v57 }
 0x18b   :  { %v1462_v11 = vrot.slane %v1397_v33, %v1461_v24 }
 0x18c   :  { %v1347_v18 = vpack.c.bf16 %v1326_v58, %v1325_v55  ;;  %v1455_v38 = vrot.slane %v1396_v49, %v1454_v42 }
 0x18d   :  { %v1232_v60 = vpop.xlane.xlu0 %1231 }
 0x18e   :  { %v1312_v17 = vmul.f32 0.00390625, %v1232_v60  ;;  %v1412_v56 = vunpack.c.l.b16 %v1347_v18  ;;  %v1436_v60 = vsel %vm1435_vm1, %v1434_v29, %v1429_v47  ;;  %v1413_v28 = vunpack.c.h.b16 %v1347_v18 }
 0x18f   :  { %v1443_v6 = vsel %vm1442_vm2, %v1441_v35, %v1436_v60  ;;  %v1489_v18 = vsub.s32 %v1486_v15, %v3523_v45 }
 0x190   :  { %v1557_v2 = vrot.slane %v1412_v56, %v1454_v42  ;;  %v1450_v52 = vsel %vm1449_vm3, %v1448_v25, %v1443_v6  ;;  %v1562_v46 = vrot.slane %v1413_v28, %v1461_v24  ;;  %v1507_v24 = vadd.s32 4294967200, %v3152_v37 }
 0x192   :  { %v1280_v63 = vpop.xlane.xlu0 %1279  ;;  %v1558_v26 = vsel %vm1456_vm4, %v1557_v2, %v1553_v27  ;;  %v1528_v27 = vadd.s32 4294967176, %v3152_v37 }
 0x193   :  { %v1328_v41 = vmul.f32 0.00390625, %v1280_v63  ;;  %v1340_v63 = vpack.c.bf16 %v1312_v17, %v1311_v7  ;;  %v1563_v35 = vsel %vm1463_vm5, %v1562_v46, %v1558_v26 }
 0x194   :  { %v3149_v4 = vpop.xlane.xlu1 %1234 }
 0x195   :  { %v1348_v30 = vpack.c.bf16 %v1328_v41, %v1327_v20  ;;  %v1313_v5 = vmul.f32 0.00390625, %v3149_v4  ;;  %v1398_v21 = vunpack.c.l.b16 %v1340_v63  ;;  %v1457_v4 = vsel %vm1456_vm4, %v1455_v38, %v1450_v52 }
 0x196   :  { %v1399_v42 = vunpack.c.h.b16 %v1340_v63  ;;  %v1464_v12 = vsel %vm1463_vm5, %v1462_v11, %v1457_v4 }
 0x197   :  { %v1414_v58 = vunpack.c.l.b16 %v1348_v30  ;;  %v1469_v57 = vrot.slane %v1398_v21, %v1468_v14  ;;  %v1415_v39 = vunpack.c.h.b16 %v1348_v30  ;;  %v1514_v30 = vadd.s32 4294967192, %v3152_v37 }
 0x198   :  { %v3156_v10 = vpop.xlane.xlu1 %1282  ;;  %v1476_v43 = vrot.slane %v1399_v42, %v1475_v0 }
 0x199   :  { %v1329_v1 = vmul.f32 0.00390625, %v3156_v10  ;;  %v1567_v47 = vrot.slane %v1414_v58, %v1468_v14  ;;  %v1471_v8 = vsel %vm1470_vm6, %v1469_v57, %v1464_v12  ;;  %v1572_v59 = vrot.slane %v1415_v39, %v1475_v0 }
 0x19a   :  { %v1510_v0 = vsub.s32 %v1507_v24, %v3523_v45  ;;  %v1478_v33 = vsel %vm1477_vm7, %v1476_v43, %v1471_v8  ;;  %v1517_v52 = vsub.s32 %v1514_v30, %v3523_v45  ;;  %v1531_v24 = vsub.s32 %v1528_v27, %v3523_v45 }
 0x19b   :  { %v3154_v3 = vpop.xlane.xlu0 %1237  ;;  %v1568_v7 = vsel %vm1470_vm6, %v1567_v47, %v1563_v35 }
 0x19c   :  { %v1314_v50 = vmul.f32 0.00390625, %v3154_v3  ;;  %v1500_v3 = vadd.s32 4294967208, %v3152_v37  ;;  %v1573_v38 = vsel %vm1477_vm7, %v1572_v59, %v1568_v7 }
 0x19e   :  { %v3168_v40 = vpop.xlane.xlu1 %1240  ;;  %v1341_v62 = vpack.c.bf16 %v1314_v50, %v1313_v5 }
 0x19f   :  { %v1315_v10 = vmul.f32 0.00390625, %v3168_v40 }
 0x1a0   :  { %v1400_v48 = vunpack.c.l.b16 %v1341_v62  ;;  %v1401_v49 = vunpack.c.h.b16 %v1341_v62 }
 0x1a1   :  { %v3161_v13 = vpop.xlane.xlu0 %1285 }
 0x1a2   :  { %v1330_v22 = vmul.f32 0.00390625, %v3161_v13  ;;  %v1483_v20 = vrot.slane %v1400_v48, %v1482_v44  ;;  %v1490_v28 = vrot.slane %v1401_v49, %v1489_v18 }
 0x1a4   :  { %v1349_v53 = vpack.c.bf16 %v1330_v22, %v1329_v1  ;;  %v1485_v5 = vsel %vm1484_vm8, %v1483_v20, %v1478_v33 }
 0x1a5   :  { %v1289_v16 = vpop.xlane.xlu1 %1288  ;;  %v1492_v11 = vsel %vm1491_vm9, %v1490_v28, %v1485_v5 }
 0x1a6   :  { %v1331_v29 = vmul.f32 0.00390625, %v1289_v16  ;;  %v1416_v41 = vunpack.c.l.b16 %v1349_v53  ;;  %v1417_v56 = vunpack.c.h.b16 %v1349_v53  ;;  %v1524_v53 = vsub.s32 %v1521_v23, %v3523_v45 }
 0x1a8   :  { %v1244_v19 = vpop.xlane.xlu0 %1243  ;;  %v1577_v6 = vrot.slane %v1416_v41, %v1482_v44  ;;  %v1582_v22 = vrot.slane %v1417_v56, %v1489_v18 }
 0x1a9   :  { %v1316_v13 = vmul.f32 0.00390625, %v1244_v19  ;;  %v1496_v19 = vsub.s32 %v1493_v54, %v3523_v45 }
 0x1aa   :  { %v1578_v44 = vsel %vm1484_vm8, %v1577_v6, %v1573_v38 }
 0x1ab   :  { %v1247_v34 = vpop.xlane.xlu1 %1246  ;;  %v1342_v51 = vpack.c.bf16 %v1316_v13, %v1315_v10 }
 0x1ac   :  { %v1317_v16 = vmul.f32 0.00390625, %v1247_v34 }
 0x1ad   :  { %v1402_v60 = vunpack.c.l.b16 %v1342_v51  ;;  %v1403_v2 = vunpack.c.h.b16 %v1342_v51 }
 0x1af   :  { %v1292_v32 = vpop.xlane.xlu0 %1291  ;;  %v1497_v34 = vrot.slane %v1402_v60, %v1496_v19 }
 0x1b0   :  { %v1332_v55 = vmul.f32 0.00390625, %v1292_v32  ;;  %v1503_v32 = vsub.s32 %v1500_v3, %v3523_v45 }
 0x1b2   :  { %v1295_v31 = vpop.xlane.xlu1 %1294  ;;  %v1350_v40 = vpack.c.bf16 %v1332_v55, %v1331_v29  ;;  %v1504_v13 = vrot.slane %v1403_v2, %v1503_v32  ;;  %v1583_v55 = vsel %vm1491_vm9, %v1582_v22, %v1578_v44 }
 0x1b3   :  { %v1333_v9 = vmul.f32 0.00390625, %v1295_v31 }
 0x1b4   :  { %v1418_v25 = vunpack.c.l.b16 %v1350_v40  ;;  %v1419_v54 = vunpack.c.h.b16 %v1350_v40 }
 0x1b5   :  { %v1250_v61 = vpop.xlane.xlu0 %1249 }
 0x1b6   :  { %v1318_v17 = vmul.f32 0.00390625, %v1250_v61  ;;  %v1587_v3 = vrot.slane %v1418_v25, %v1496_v19  ;;  %v1499_v61 = vsel %vm1498_vm10, %v1497_v34, %v1492_v11  ;;  %v1592_v10 = vrot.slane %v1419_v54, %v1503_v32  ;;  %v1711_v25 = vld [vmem:[%s3235_s4] ss:$0 sm:$0xff] }
 0x1b7   :  { %v1506_v19 = vsel %vm1505_vm11, %v1504_v13, %v1499_v61 }
 0x1b8   :  { %v1343_v63 = vpack.c.bf16 %v1318_v17, %v1317_v16  ;;  %v1253_v50 = vpop.xlane.xlu1 %1252  ;;  %v1588_v39 = vsel %vm1498_vm10, %v1587_v3, %v1583_v55 }
 0x1b9   :  { %v1319_v1 = vmul.f32 0.00390625, %v1253_v50  ;;  %v1593_v40 = vsel %vm1505_vm11, %v1592_v10, %v1588_v39 }
 0x1ba   :  { %v1404_v21 = vunpack.c.l.b16 %v1343_v63  ;;  %v1405_v26 = vunpack.c.h.b16 %v1343_v63 }
 0x1bc   :  { %v1298_v14 = vpop.xlane.xlu0 %1297  ;;  %v1511_v42 = vrot.slane %v1404_v21, %v1510_v0  ;;  %v1518_v51 = vrot.slane %v1405_v26, %v1517_v52 }
 0x1bd   :  { %v1334_v15 = vmul.f32 0.00390625, %v1298_v14 }
 0x1be   :  { %v1513_v12 = vsel %vm1512_vm12, %v1511_v42, %v1506_v19 }
 0x1bf   :  { %v1351_v36 = vpack.c.bf16 %v1334_v15, %v1333_v9  ;;  %v1301_v46 = vpop.xlane.xlu1 %1300  ;;  %v1520_v49 = vsel %vm1519_vm13, %v1518_v51, %v1513_v12 }
 0x1c0   :  { %v1335_v48 = vmul.f32 0.00390625, %v1301_v46 }
 0x1c1   :  { %v1420_v62 = vunpack.c.l.b16 %v1351_v36  ;;  %v1421_v47 = vunpack.c.h.b16 %v1351_v36 }
 0x1c2   :  { %v1256_v58 = vpop.xlane.xlu0 %1255 }
 0x1c3   :  { %v1320_v4 = vmul.f32 0.00390625, %v1256_v58  ;;  %v1597_v18 = vrot.slane %v1420_v62, %v1510_v0  ;;  %v1602_v8 = vrot.slane %v1421_v47, %v1517_v52 }
 0x1c5   :  { %v1344_v57 = vpack.c.bf16 %v1320_v4, %v1319_v1  ;;  %v1598_v43 = vsel %vm1512_vm12, %v1597_v18, %v1593_v40 }
 0x1c6   :  { %v1304_v37 = vpop.xlane.xlu0 %1303  ;;  %v1603_v45 = vsel %vm1519_vm13, %v1602_v8, %v1598_v43 }
 0x1c7   :  { %v1406_v29 = vunpack.c.l.b16 %v1344_v57  ;;  %v1336_v31 = vmul.f32 0.00390625, %v1304_v37  ;;  %v1407_v17 = vunpack.c.h.b16 %v1344_v57 }
 0x1c9   :  { %v1525_v35 = vrot.slane %v1406_v29, %v1524_v53  ;;  %v1352_v41 = vpack.c.bf16 %v1336_v31, %v1335_v48  ;;  %v1532_v7 = vrot.slane %v1407_v17, %v1531_v24 }
 0x1cb   :  { %v1422_v59 = vunpack.c.l.b16 %v1352_v41  ;;  %v1423_v16 = vunpack.c.h.b16 %v1352_v41  ;;  %v1527_v14 = vsel %vm1526_vm14, %v1525_v35, %v1520_v49 }
 0x1cc   :  { %v1534_v9 = vsel %vm1533_vm15, %v1532_v7, %v1527_v14 }
 0x1cd   :  { %v1607_v20 = vrot.slane %v1422_v59, %v1524_v53  ;;  %v1612_v56 = vrot.slane %v1423_v16, %v1531_v24 }
 0x1cf   :  { %v1608_v60 = vsel %vm1526_vm14, %v1607_v20, %v1603_v45 }
 0x1d0   :  { %v1613_v63 = vsel %vm1533_vm15, %v1612_v56, %v1608_v60 }
 0x1d1   :  { %v1615_v15 = vsel %vm1614_vm0, %v1613_v63, %v1534_v9 }
 0x1d2   :  { %v1616_v6 = vpack.c.b16 %v1615_v15, %v1615_v15 }
 0x1d4   :  { %1785 = vmatmul.mubr.bf16.vlgmr.msra.gmra.mxu0 %v1616_v6 }
 0x294   :  { %v1700_v30 = vpop.f32.mrf.mxu0 }
 0x295   :  { %v1701_v50 = vadd.f32 %v1711_v25, %v1700_v30 }
 0x296   :  { %v1786_v32 = vpop.f32.mrf.mxu0 }
 0x297   :  { %1706 = vst [vmem:[%s3236_s5] sm:$0x3] %v1701_v50 }
 0x298   :  { %v1703_v0 = vpop.f32.mrf.mxu0 }
 0x29a   :  { %v1787_v36 = vpop.f32.mrf.mxu0 }

</bundles_post_ra>
